<compile_context>
chip_gen: v7x
topology: tpu7x:2x2x1
jax: 0.10.0
libtpu: 0.0.40
codegen_flags: <defaults>
</compile_context>

<pallas_src>
import numpy as np
import jax
import jax.numpy as jnp
from jax.experimental import pallas as pl
from jax.experimental.pallas import tpu as pltpu

# ---- model dimensions (fixed by the PyTorch module) ----
D_IN = 2000
D_H = 1024
D_KAN_IN = 10
D_OUT = 2
GRID_SIZE = 10
SPLINE_ORDER = 3
N_COEF = GRID_SIZE + SPLINE_ORDER            # 13 spline basis functions / feature
N_INTERVALS = GRID_SIZE + 2 * SPLINE_ORDER   # 16 order-0 knot intervals
N_LANES = N_INTERVALS * D_KAN_IN             # 160 lanes; lane = knot*10 + feature

TN = 256                                     # W1 output-column tile
N_STEPS = D_H // TN                          # 4 grid steps

# Uniform B-spline knot grid (identical for every feature), as in efficient-kan:
#   grid = arange(-k, G+k+1) * h + grid_range[0],  h = 2 / G
_H = 2.0 / GRID_SIZE
GRID = (np.arange(-SPLINE_ORDER, GRID_SIZE + SPLINE_ORDER + 1, dtype=np.float32) * _H
        - 1.0)                               # (17,) knots

# Constant tables, passed to the kernel as INPUTS (never captured).
KNOT_LO_NP = np.repeat(GRID[:-1], D_KAN_IN).reshape(1, N_LANES).astype(np.float32)
KNOT_HI_NP = np.repeat(GRID[1:], D_KAN_IN).reshape(1, N_LANES).astype(np.float32)
# (10,160) 0/1 matrix: z (B,10) @ TILE -> z tiled 16x along lanes (knot-major).
TILE_NP = np.tile(np.eye(D_KAN_IN, dtype=np.float32), (1, N_INTERVALS))
# (160,160) 0/1 matrix: bases @ SHIFT gives bases shifted by +10 lanes (0-fill tail).
SHIFT_NP = np.zeros((N_LANES, N_LANES), dtype=np.float32)
SHIFT_NP[np.arange(D_KAN_IN, N_LANES), np.arange(N_LANES - D_KAN_IN)] = 1.0


def _silu(v):
    return v * (1.0 / (1.0 + jnp.exp(-v)))


def model_kernel(x_ref, w1_ref, b1_ref, w2_ref, b2_ref, basew_ref, splinew_ref,
                 klo_ref, khi_ref, tile_ref, shift_ref, o_ref, z_acc):
    j = pl.program_id(0)

    @pl.when(j == 0)
    def _():
        z_acc[...] = jnp.zeros_like(z_acc)

    # Layer-1 column chunk fused with the matching K-chunk of layer 2:
    #   h_j = silu(x @ W1[:, jTN:(j+1)TN] + b1_j);  z += h_j @ W2[jTN:(j+1)TN, :]
    h = jnp.dot(x_ref[...], w1_ref[...], preferred_element_type=jnp.float32)
    h = _silu(h + b1_ref[...])                                        # (B, TN) f32
    z_acc[...] += jnp.dot(h, w2_ref[...], preferred_element_type=jnp.float32)

    @pl.when(j == N_STEPS - 1)
    def _():
        z = _silu(z_acc[...] + b2_ref[...])                           # (B, 10) KAN input

        # KAN base path: silu(z) @ base_w
        out = jnp.dot(_silu(z), basew_ref[...], preferred_element_type=jnp.float32)

        # KAN spline path, fixed lane width 160 (lane = knot_index*10 + feature).
        zt = jnp.dot(z, tile_ref[...], preferred_element_type=jnp.float32)  # (B,160)
        klo = klo_ref[...]                                            # (1,160)
        bases = jnp.logical_and(zt >= klo, zt < khi_ref[...]).astype(jnp.float32)
        # Cox-de Boor recursion; uniform grid => knot differences are k*h (scalars).
        for k in range(1, SPLINE_ORDER + 1):
            inv = 1.0 / (k * _H)
            left = (zt - klo) * inv                                   # (z - G[i]) / (k h)
            right = (klo + (k + 1) * _H - zt) * inv                   # (G[i+k+1]-z)/(k h)
            shifted = jnp.dot(bases, shift_ref[...],                  # bases[:, l+10]
                              preferred_element_type=jnp.float32)
            bases = left * bases + right * shifted
        # Only the first 130 lanes are valid cubic bases; spline weight rows
        # 130..159 are zero, so the padded dot drops the rest.
        out = out + jnp.dot(bases, splinew_ref[...], preferred_element_type=jnp.float32)
        o_ref[...] = out


def model_forward(x, params):
    w1, b1, w2, b2, base_w, spline_flat = params
    B = x.shape[0]
    x_bf = x.astype(jnp.bfloat16)        # bf16 operands for the dominant GEMM, f32 acc

    spline_pad = jnp.zeros((N_LANES, D_OUT), jnp.float32).at[:N_COEF * D_KAN_IN].set(
        spline_flat)
    knot_lo = jnp.asarray(KNOT_LO_NP)
    knot_hi = jnp.asarray(KNOT_HI_NP)
    tile_m = jnp.asarray(TILE_NP)
    shift_m = jnp.asarray(SHIFT_NP)

    grid_spec = pltpu.PrefetchScalarGridSpec(
        num_scalar_prefetch=0,
        grid=(N_STEPS,),
        in_specs=[
            pl.BlockSpec((B, D_IN), lambda j: (0, 0)),                 # x (resident)
            pl.BlockSpec((D_IN, TN), lambda j: (0, j)),                # W1 (streamed)
            pl.BlockSpec((1, TN), lambda j: (0, j)),                   # b1 chunk
            pl.BlockSpec((TN, D_KAN_IN), lambda j: (j, 0)),            # W2 chunk
            pl.BlockSpec((1, D_KAN_IN), lambda j: (0, 0)),             # b2
            pl.BlockSpec((D_KAN_IN, D_OUT), lambda j: (0, 0)),         # KAN base weight
            pl.BlockSpec((N_LANES, D_OUT), lambda j: (0, 0)),          # padded spline w
            pl.BlockSpec((1, N_LANES), lambda j: (0, 0)),              # knot_lo
            pl.BlockSpec((1, N_LANES), lambda j: (0, 0)),              # knot_hi
            pl.BlockSpec((D_KAN_IN, N_LANES), lambda j: (0, 0)),       # tile matrix
            pl.BlockSpec((N_LANES, N_LANES), lambda j: (0, 0)),        # lane-shift matrix
        ],
        out_specs=pl.BlockSpec((B, D_OUT), lambda j: (0, 0)),
        scratch_shapes=[pltpu.VMEM((B, D_KAN_IN), jnp.float32)],       # z accumulator
    )
    return pl.pallas_call(
        model_kernel,
        out_shape=jax.ShapeDtypeStruct((B, D_OUT), jnp.float32),
        grid_spec=grid_spec,
        compiler_params=pltpu.CompilerParams(
            dimension_semantics=("arbitrary",),    # grid axis reduces into z_acc
            vmem_limit_bytes=32 * 1024 * 1024,
        ),
    )(x_bf, w1, b1, w2, b2, base_w, spline_pad, knot_lo, knot_hi, tile_m, shift_m)


def reference_forward(x, params):
    """Pure-JAX f32 reference mirroring the PyTorch forward (for validation)."""
    w1, b1, w2, b2, base_w, spline_flat = params
    hp = jax.lax.Precision.HIGHEST
    h = jax.nn.silu(jnp.dot(x, w1.astype(jnp.float32), precision=hp) + b1)
    z = jax.nn.silu(jnp.dot(h, w2, precision=hp) + b2)
    base = jnp.dot(jax.nn.silu(z), base_w, precision=hp)
    g = jnp.asarray(GRID)
    xk = z[:, :, None]                                                 # (B, 10, 1)
    bases = ((xk >= g[:-1]) & (xk < g[1:])).astype(jnp.float32)
    for k in range(1, SPLINE_ORDER + 1):
        bases = ((xk - g[:-(k + 1)]) / (g[k:-1] - g[:-(k + 1)]) * bases[:, :, :-1]
                 + (g[k + 1:] - xk) / (g[k + 1:] - g[1:-k]) * bases[:, :, 1:])
    spline_w = spline_flat.reshape(N_COEF, D_KAN_IN, D_OUT)            # [coef, in, out]
    spline = jnp.einsum('bic,cio->bo', bases, spline_w, precision=hp)
    return base + spline


def make_params(key):
    ks = jax.random.split(key, 7)
    w1 = (jax.random.normal(ks[0], (D_IN, D_H), jnp.float32)
          * (1.0 / np.sqrt(D_IN))).astype(jnp.bfloat16)                # stored bf16
    b1 = jax.random.normal(ks[1], (1, D_H), jnp.float32) * 0.01
    w2 = jax.random.normal(ks[2], (D_H, D_KAN_IN), jnp.float32) * (1.0 / np.sqrt(D_H))
    b2 = jax.random.normal(ks[3], (1, D_KAN_IN), jnp.float32) * 0.01
    base_w = jax.random.normal(ks[4], (D_KAN_IN, D_OUT), jnp.float32) * (1.0 / np.sqrt(D_KAN_IN))
    # efficient-kan: scaled_spline_weight = spline_weight * spline_scaler[..., None]
    spline_raw = jax.random.normal(ks[5], (D_OUT, D_KAN_IN, N_COEF), jnp.float32) * 0.1
    spline_scaler = jax.random.normal(ks[6], (D_OUT, D_KAN_IN), jnp.float32) * (1.0 / np.sqrt(D_KAN_IN))
    scaled = spline_raw * spline_scaler[..., None]                     # (out, in, coef)
    # Flatten to the kernel's lane layout: row = coef*10 + feature.
    spline_flat = jnp.transpose(scaled, (2, 1, 0)).reshape(N_COEF * D_KAN_IN, D_OUT)
    return (w1, b1, w2, b2, base_w, spline_flat)


if __name__ == "__main__":
    key = jax.random.PRNGKey(0)
    k_param, k_x = jax.random.split(key)
    params = make_params(k_param)

    B = 8
    x = jax.random.normal(k_x, (B, D_IN), jnp.float32)

    out = jax.block_until_ready(model_forward(x, params))
    ref = jax.block_until_ready(reference_forward(x, params))

    assert out.shape == (B, D_OUT) and out.dtype == jnp.float32
    # The dominant GEMM runs with bf16 operands (x cast, W1 stored bf16) and f32
    # accumulation -> compare against the f32 reference with a matching tolerance.
    err = float(np.max(np.abs(np.asarray(out) - np.asarray(ref))))
    assert np.allclose(np.asarray(out), np.asarray(ref), atol=2e-2, rtol=2e-2), err
    print("KERNEL_OK")
</pallas_src>

<mosaic_0001>
module attributes {stable_mosaic.version = 11 : i64} {
  func.func @model_kernel(%arg0: i32, %arg1: memref<8x2000xbf16, #tpu.memory_space<vmem>>, %arg2: memref<2000x256xbf16, #tpu.memory_space<vmem>>, %arg3: memref<1x256xf32, #tpu.memory_space<vmem>>, %arg4: memref<256x10xf32, #tpu.memory_space<vmem>>, %arg5: memref<1x10xf32, #tpu.memory_space<vmem>>, %arg6: memref<10x2xf32, #tpu.memory_space<vmem>>, %arg7: memref<160x2xf32, #tpu.memory_space<vmem>>, %arg8: memref<1x160xf32, #tpu.memory_space<vmem>>, %arg9: memref<1x160xf32, #tpu.memory_space<vmem>>, %arg10: memref<10x160xf32, #tpu.memory_space<vmem>>, %arg11: memref<160x160xf32, #tpu.memory_space<vmem>>, %arg12: memref<8x2xf32, #tpu.memory_space<vmem>>, %arg13: memref<8x10xf32, #tpu.memory_space<vmem>>) attributes {dimension_semantics = [#tpu.dimension_semantics<arbitrary>], iteration_bounds = array<i64: 4>, scalar_prefetch = 0 : i64, scratch_operands = 1 : i64, tpu.core_type = #tpu.core_type<tc>, window_params = [{pipeline_mode = #tpu.pipeline_mode<synchronous>, transform_indices = @transform_0, window_bounds = array<i64: 8, 2000>}, {transform_indices = @transform_1, window_bounds = array<i64: 2000, 256>}, {transform_indices = @transform_2, window_bounds = array<i64: 1, 256>}, {transform_indices = @transform_3, window_bounds = array<i64: 256, 10>}, {pipeline_mode = #tpu.pipeline_mode<synchronous>, transform_indices = @transform_4, window_bounds = array<i64: 1, 10>}, {pipeline_mode = #tpu.pipeline_mode<synchronous>, transform_indices = @transform_5, window_bounds = array<i64: 10, 2>}, {pipeline_mode = #tpu.pipeline_mode<synchronous>, transform_indices = @transform_6, window_bounds = array<i64: 160, 2>}, {pipeline_mode = #tpu.pipeline_mode<synchronous>, transform_indices = @transform_7, window_bounds = array<i64: 1, 160>}, {pipeline_mode = #tpu.pipeline_mode<synchronous>, transform_indices = @transform_8, window_bounds = array<i64: 1, 160>}, {pipeline_mode = #tpu.pipeline_mode<synchronous>, transform_indices = @transform_9, window_bounds = array<i64: 10, 160>}, {pipeline_mode = #tpu.pipeline_mode<synchronous>, transform_indices = @transform_10, window_bounds = array<i64: 160, 160>}, {pipeline_mode = #tpu.pipeline_mode<synchronous>, transform_indices = @transform_11, window_bounds = array<i64: 8, 2>}]} {
    %c0_i32 = arith.constant 0 : i32
    %0 = arith.cmpi eq, %arg0, %c0_i32 : i32
    %1 = arith.extui %0 : i1 to i32
    %c0_i32_0 = arith.constant 0 : i32
    %2 = arith.cmpi ne, %1, %c0_i32_0 : i32
    scf.if %2 {
      %cst_17 = arith.constant 0.000000e+00 : f32
      %25 = vector.broadcast %cst_17 : f32 to vector<8x10xf32>
      %c0_18 = arith.constant 0 : index
      %c0_19 = arith.constant 0 : index
      %26 = vector.load %arg13[%c0_18, %c0_19] : memref<8x10xf32, #tpu.memory_space<vmem>>, vector<8x10xf32>
      tpu.vector_store %arg13[%c0_18, %c0_19], %25 {strides = array<i32>} : memref<8x10xf32, #tpu.memory_space<vmem>>, vector<8x10xf32>,
    } else {
    }
    %c0 = arith.constant 0 : index
    %c0_1 = arith.constant 0 : index
    %3 = vector.load %arg1[%c0, %c0_1] : memref<8x2000xbf16, #tpu.memory_space<vmem>>, vector<8x2000xbf16>
    %c0_2 = arith.constant 0 : index
    %c0_3 = arith.constant 0 : index
    %4 = vector.load %arg2[%c0_2, %c0_3] : memref<2000x256xbf16, #tpu.memory_space<vmem>>, vector<2000x256xbf16>
    %cst = arith.constant dense<0.000000e+00> : vector<8x256xf32>
    %5 = tpu.matmul %3, %4, %cst {dimension_numbers = #tpu.dot_dimension_numbers<[1], [0], [0], [1], [0, 0, 1, 1], [], []>} : vector<8x2000xbf16>, vector<2000x256xbf16>, vector<8x256xf32> -> vector<8x256xf32>
    %c0_4 = arith.constant 0 : index
    %c0_5 = arith.constant 0 : index
    %6 = vector.load %arg3[%c0_4, %c0_5] : memref<1x256xf32, #tpu.memory_space<vmem>>, vector<1x256xf32>
    %7 = vector.broadcast %6 : vector<1x256xf32> to vector<8x256xf32>
    %8 = arith.addf %5, %7 : vector<8x256xf32>
    %cst_6 = arith.constant 0.000000e+00 : f32
    %9 = vector.broadcast %cst_6 : f32 to vector<8x256xf32>
    %10 = arith.subf %9, %8 : vector<8x256xf32>
    %11 = math.exp %10 : vector<8x256xf32>
    %cst_7 = arith.constant 1.000000e+00 : f32
    %12 = vector.broadcast %cst_7 : f32 to vector<8x256xf32>
    %13 = arith.addf %12, %11 : vector<8x256xf32>
    %cst_8 = arith.constant 1.000000e+00 : f32
    %14 = vector.broadcast %cst_8 : f32 to vector<8x256xf32>
    %15 = arith.divf %14, %13 : vector<8x256xf32>
    %16 = arith.mulf %8, %15 : vector<8x256xf32>
    %c0_9 = arith.constant 0 : index
    %c0_10 = arith.constant 0 : index
    %17 = vector.load %arg13[%c0_9, %c0_10] : memref<8x10xf32, #tpu.memory_space<vmem>>, vector<8x10xf32>
    %c0_11 = arith.constant 0 : index
    %c0_12 = arith.constant 0 : index
    %18 = vector.load %arg4[%c0_11, %c0_12] : memref<256x10xf32, #tpu.memory_space<vmem>>, vector<256x10xf32>
    %cst_13 = arith.constant dense<0.000000e+00> : vector<8x10xf32>
    %19 = tpu.matmul %16, %18, %cst_13 {dimension_numbers = #tpu.dot_dimension_numbers<[1], [0], [0], [1], [0, 0, 1, 1], [], []>} : vector<8x256xf32>, vector<256x10xf32>, vector<8x10xf32> -> vector<8x10xf32>
    %20 = arith.addf %17, %19 : vector<8x10xf32>
    %c0_14 = arith.constant 0 : index
    %c0_15 = arith.constant 0 : index
    %21 = vector.load %arg13[%c0_14, %c0_15] : memref<8x10xf32, #tpu.memory_space<vmem>>, vector<8x10xf32>
    tpu.vector_store %arg13[%c0_14, %c0_15], %20 {strides = array<i32>} : memref<8x10xf32, #tpu.memory_space<vmem>>, vector<8x10xf32>,
    %c3_i32 = arith.constant 3 : i32
    %22 = arith.cmpi eq, %arg0, %c3_i32 : i32
    %23 = arith.extui %22 : i1 to i32
    %c0_i32_16 = arith.constant 0 : i32
    %24 = arith.cmpi ne, %23, %c0_i32_16 : i32
    scf.if %24 {
      %c0_17 = arith.constant 0 : index
      %c0_18 = arith.constant 0 : index
      %25 = vector.load %arg13[%c0_17, %c0_18] : memref<8x10xf32, #tpu.memory_space<vmem>>, vector<8x10xf32>
      %c0_19 = arith.constant 0 : index
      %c0_20 = arith.constant 0 : index
      %26 = vector.load %arg5[%c0_19, %c0_20] : memref<1x10xf32, #tpu.memory_space<vmem>>, vector<1x10xf32>
      %27 = vector.broadcast %26 : vector<1x10xf32> to vector<8x10xf32>
      %28 = arith.addf %25, %27 : vector<8x10xf32>
      %cst_21 = arith.constant 0.000000e+00 : f32
      %29 = vector.broadcast %cst_21 : f32 to vector<8x10xf32>
      %30 = arith.subf %29, %28 : vector<8x10xf32>
      %31 = math.exp %30 : vector<8x10xf32>
      %cst_22 = arith.constant 1.000000e+00 : f32
      %32 = vector.broadcast %cst_22 : f32 to vector<8x10xf32>
      %33 = arith.addf %32, %31 : vector<8x10xf32>
      %cst_23 = arith.constant 1.000000e+00 : f32
      %34 = vector.broadcast %cst_23 : f32 to vector<8x10xf32>
      %35 = arith.divf %34, %33 : vector<8x10xf32>
      %36 = arith.mulf %28, %35 : vector<8x10xf32>
      %cst_24 = arith.constant 0.000000e+00 : f32
      %37 = vector.broadcast %cst_24 : f32 to vector<8x10xf32>
      %38 = arith.subf %37, %36 : vector<8x10xf32>
      %39 = math.exp %38 : vector<8x10xf32>
      %cst_25 = arith.constant 1.000000e+00 : f32
      %40 = vector.broadcast %cst_25 : f32 to vector<8x10xf32>
      %41 = arith.addf %40, %39 : vector<8x10xf32>
      %cst_26 = arith.constant 1.000000e+00 : f32
      %42 = vector.broadcast %cst_26 : f32 to vector<8x10xf32>
      %43 = arith.divf %42, %41 : vector<8x10xf32>
      %44 = arith.mulf %36, %43 : vector<8x10xf32>
      %c0_27 = arith.constant 0 : index
      %c0_28 = arith.constant 0 : index
      %45 = vector.load %arg6[%c0_27, %c0_28] : memref<10x2xf32, #tpu.memory_space<vmem>>, vector<10x2xf32>
      %cst_29 = arith.constant dense<0.000000e+00> : vector<8x2xf32>
      %46 = tpu.matmul %44, %45, %cst_29 {dimension_numbers = #tpu.dot_dimension_numbers<[1], [0], [0], [1], [0, 0, 1, 1], [], []>} : vector<8x10xf32>, vector<10x2xf32>, vector<8x2xf32> -> vector<8x2xf32>
      %c0_30 = arith.constant 0 : index
      %c0_31 = arith.constant 0 : index
      %47 = vector.load %arg10[%c0_30, %c0_31] : memref<10x160xf32, #tpu.memory_space<vmem>>, vector<10x160xf32>
      %cst_32 = arith.constant dense<0.000000e+00> : vector<8x160xf32>
      %48 = tpu.matmul %36, %47, %cst_32 {dimension_numbers = #tpu.dot_dimension_numbers<[1], [0], [0], [1], [0, 0, 1, 1], [], []>} : vector<8x10xf32>, vector<10x160xf32>, vector<8x160xf32> -> vector<8x160xf32>
      %c0_33 = arith.constant 0 : index
      %c0_34 = arith.constant 0 : index
      %49 = vector.load %arg8[%c0_33, %c0_34] : memref<1x160xf32, #tpu.memory_space<vmem>>, vector<1x160xf32>
      %50 = vector.broadcast %49 : vector<1x160xf32> to vector<8x160xf32>
      %51 = arith.cmpf oge, %48, %50 : vector<8x160xf32>
      %c0_35 = arith.constant 0 : index
      %c0_36 = arith.constant 0 : index
      %52 = vector.load %arg9[%c0_35, %c0_36] : memref<1x160xf32, #tpu.memory_space<vmem>>, vector<1x160xf32>
      %53 = vector.broadcast %52 : vector<1x160xf32> to vector<8x160xf32>
      %54 = arith.cmpf olt, %48, %53 : vector<8x160xf32>
      %55 = arith.andi %51, %54 : vector<8x160xi1>
      %56 = arith.extui %55 : vector<8x160xi1> to vector<8x160xi32>
      %57 = arith.sitofp %56 : vector<8x160xi32> to vector<8x160xf32>
      %58 = vector.broadcast %49 : vector<1x160xf32> to vector<8x160xf32>
      %59 = arith.subf %48, %58 : vector<8x160xf32>
      %cst_37 = arith.constant 5.000000e+00 : f32
      %60 = vector.broadcast %cst_37 : f32 to vector<8x160xf32>
      %61 = arith.mulf %59, %60 : vector<8x160xf32>
      %cst_38 = arith.constant 4.000000e-01 : f32
      %62 = vector.broadcast %cst_38 : f32 to vector<1x160xf32>
      %63 = arith.addf %49, %62 : vector<1x160xf32>
      %64 = vector.broadcast %63 : vector<1x160xf32> to vector<8x160xf32>
      %65 = arith.subf %64, %48 : vector<8x160xf32>
      %cst_39 = arith.constant 5.000000e+00 : f32
      %66 = vector.broadcast %cst_39 : f32 to vector<8x160xf32>
      %67 = arith.mulf %65, %66 : vector<8x160xf32>
      %c0_40 = arith.constant 0 : index
      %c0_41 = arith.constant 0 : index
      %68 = vector.load %arg11[%c0_40, %c0_41] : memref<160x160xf32, #tpu.memory_space<vmem>>, vector<160x160xf32>
      %cst_42 = arith.constant dense<0.000000e+00> : vector<8x160xf32>
      %69 = tpu.matmul %57, %68, %cst_42 {dimension_numbers = #tpu.dot_dimension_numbers<[1], [0], [0], [1], [0, 0, 1, 1], [], []>} : vector<8x160xf32>, vector<160x160xf32>, vector<8x160xf32> -> vector<8x160xf32>
      %70 = arith.mulf %61, %57 : vector<8x160xf32>
      %71 = arith.mulf %67, %69 : vector<8x160xf32>
      %72 = arith.addf %70, %71 : vector<8x160xf32>
      %73 = vector.broadcast %49 : vector<1x160xf32> to vector<8x160xf32>
      %74 = arith.subf %48, %73 : vector<8x160xf32>
      %cst_43 = arith.constant 2.500000e+00 : f32
      %75 = vector.broadcast %cst_43 : f32 to vector<8x160xf32>
      %76 = arith.mulf %74, %75 : vector<8x160xf32>
      %cst_44 = arith.constant 6.000000e-01 : f32
      %77 = vector.broadcast %cst_44 : f32 to vector<1x160xf32>
      %78 = arith.addf %49, %77 : vector<1x160xf32>
      %79 = vector.broadcast %78 : vector<1x160xf32> to vector<8x160xf32>
      %80 = arith.subf %79, %48 : vector<8x160xf32>
      %cst_45 = arith.constant 2.500000e+00 : f32
      %81 = vector.broadcast %cst_45 : f32 to vector<8x160xf32>
      %82 = arith.mulf %80, %81 : vector<8x160xf32>
      %c0_46 = arith.constant 0 : index
      %c0_47 = arith.constant 0 : index
      %83 = vector.load %arg11[%c0_46, %c0_47] : memref<160x160xf32, #tpu.memory_space<vmem>>, vector<160x160xf32>
      %cst_48 = arith.constant dense<0.000000e+00> : vector<8x160xf32>
      %84 = tpu.matmul %72, %83, %cst_48 {dimension_numbers = #tpu.dot_dimension_numbers<[1], [0], [0], [1], [0, 0, 1, 1], [], []>} : vector<8x160xf32>, vector<160x160xf32>, vector<8x160xf32> -> vector<8x160xf32>
      %85 = arith.mulf %76, %72 : vector<8x160xf32>
      %86 = arith.mulf %82, %84 : vector<8x160xf32>
      %87 = arith.addf %85, %86 : vector<8x160xf32>
      %88 = vector.broadcast %49 : vector<1x160xf32> to vector<8x160xf32>
      %89 = arith.subf %48, %88 : vector<8x160xf32>
      %cst_49 = arith.constant 1.66666663 : f32
      %90 = vector.broadcast %cst_49 : f32 to vector<8x160xf32>
      %91 = arith.mulf %89, %90 : vector<8x160xf32>
      %cst_50 = arith.constant 8.000000e-01 : f32
      %92 = vector.broadcast %cst_50 : f32 to vector<1x160xf32>
      %93 = arith.addf %49, %92 : vector<1x160xf32>
      %94 = vector.broadcast %93 : vector<1x160xf32> to vector<8x160xf32>
      %95 = arith.subf %94, %48 : vector<8x160xf32>
      %cst_51 = arith.constant 1.66666663 : f32
      %96 = vector.broadcast %cst_51 : f32 to vector<8x160xf32>
      %97 = arith.mulf %95, %96 : vector<8x160xf32>
      %c0_52 = arith.constant 0 : index
      %c0_53 = arith.constant 0 : index
      %98 = vector.load %arg11[%c0_52, %c0_53] : memref<160x160xf32, #tpu.memory_space<vmem>>, vector<160x160xf32>
      %cst_54 = arith.constant dense<0.000000e+00> : vector<8x160xf32>
      %99 = tpu.matmul %87, %98, %cst_54 {dimension_numbers = #tpu.dot_dimension_numbers<[1], [0], [0], [1], [0, 0, 1, 1], [], []>} : vector<8x160xf32>, vector<160x160xf32>, vector<8x160xf32> -> vector<8x160xf32>
      %100 = arith.mulf %91, %87 : vector<8x160xf32>
      %101 = arith.mulf %97, %99 : vector<8x160xf32>
      %102 = arith.addf %100, %101 : vector<8x160xf32>
      %c0_55 = arith.constant 0 : index
      %c0_56 = arith.constant 0 : index
      %103 = vector.load %arg7[%c0_55, %c0_56] : memref<160x2xf32, #tpu.memory_space<vmem>>, vector<160x2xf32>
      %cst_57 = arith.constant dense<0.000000e+00> : vector<8x2xf32>
      %104 = tpu.matmul %102, %103, %cst_57 {dimension_numbers = #tpu.dot_dimension_numbers<[1], [0], [0], [1], [0, 0, 1, 1], [], []>} : vector<8x160xf32>, vector<160x2xf32>, vector<8x2xf32> -> vector<8x2xf32>
      %105 = arith.addf %46, %104 : vector<8x2xf32>
      %c0_58 = arith.constant 0 : index
      %c0_59 = arith.constant 0 : index
      %106 = vector.load %arg12[%c0_58, %c0_59] : memref<8x2xf32, #tpu.memory_space<vmem>>, vector<8x2xf32>
      tpu.vector_store %arg12[%c0_58, %c0_59], %105 {strides = array<i32>} : memref<8x2xf32, #tpu.memory_space<vmem>>, vector<8x2xf32>,
    } else {
    }
    return
  }
  func.func @transform_0(%arg0: i32) -> (i32, i32) {
    %c0_i32 = arith.constant 0 : i32
    %c0_i32_0 = arith.constant 0 : i32
    %c0_i32_1 = arith.constant 0 : i32
    return %c0_i32, %c0_i32_0 : i32, i32
  }
  func.func @transform_1(%arg0: i32) -> (i32, i32) {
    %c0_i32 = arith.constant 0 : i32
    %c0_i32_0 = arith.constant 0 : i32
    return %c0_i32, %arg0 : i32, i32
  }
  func.func @transform_2(%arg0: i32) -> (i32, i32) {
    %c0_i32 = arith.constant 0 : i32
    %c0_i32_0 = arith.constant 0 : i32
    return %c0_i32, %arg0 : i32, i32
  }
  func.func @transform_3(%arg0: i32) -> (i32, i32) {
    %c0_i32 = arith.constant 0 : i32
    %c0_i32_0 = arith.constant 0 : i32
    return %arg0, %c0_i32 : i32, i32
  }
  func.func @transform_4(%arg0: i32) -> (i32, i32) {
    %c0_i32 = arith.constant 0 : i32
    %c0_i32_0 = arith.constant 0 : i32
    %c0_i32_1 = arith.constant 0 : i32
    return %c0_i32, %c0_i32_0 : i32, i32
  }
  func.func @transform_5(%arg0: i32) -> (i32, i32) {
    %c0_i32 = arith.constant 0 : i32
    %c0_i32_0 = arith.constant 0 : i32
    %c0_i32_1 = arith.constant 0 : i32
    return %c0_i32, %c0_i32_0 : i32, i32
  }
  func.func @transform_6(%arg0: i32) -> (i32, i32) {
    %c0_i32 = arith.constant 0 : i32
    %c0_i32_0 = arith.constant 0 : i32
    %c0_i32_1 = arith.constant 0 : i32
    return %c0_i32, %c0_i32_0 : i32, i32
  }
  func.func @transform_7(%arg0: i32) -> (i32, i32) {
    %c0_i32 = arith.constant 0 : i32
    %c0_i32_0 = arith.constant 0 : i32
    %c0_i32_1 = arith.constant 0 : i32
    return %c0_i32, %c0_i32_0 : i32, i32
  }
  func.func @transform_8(%arg0: i32) -> (i32, i32) {
    %c0_i32 = arith.constant 0 : i32
    %c0_i32_0 = arith.constant 0 : i32
    %c0_i32_1 = arith.constant 0 : i32
    return %c0_i32, %c0_i32_0 : i32, i32
  }
  func.func @transform_9(%arg0: i32) -> (i32, i32) {
    %c0_i32 = arith.constant 0 : i32
    %c0_i32_0 = arith.constant 0 : i32
    %c0_i32_1 = arith.constant 0 : i32
    return %c0_i32, %c0_i32_0 : i32, i32
  }
  func.func @transform_10(%arg0: i32) -> (i32, i32) {
    %c0_i32 = arith.constant 0 : i32
    %c0_i32_0 = arith.constant 0 : i32
    %c0_i32_1 = arith.constant 0 : i32
    return %c0_i32, %c0_i32_0 : i32, i32
  }
  func.func @transform_11(%arg0: i32) -> (i32, i32) {
    %c0_i32 = arith.constant 0 : i32
    %c0_i32_0 = arith.constant 0 : i32
    %c0_i32_1 = arith.constant 0 : i32
    return %c0_i32, %c0_i32_0 : i32, i32
  }
}

</mosaic_0001>

<bundles_post_ra>
// kernel: tpu_custom_call.1
= control target key start
LH: loop header
LB: loop body
LE: loop exit
PB: predicated region body
PF: predicated region fallthrough
CT: control target
= control target key end

     0   :  { %s5672_s0 = inlined_call_operand.hbm [shape: bf16[8,2000], index: 0, kind: input, shape index: {}]   ;;  %s5673_s1 = inlined_call_operand.hbm [shape: bf16[2000,1024], index: 1, kind: input, shape index: {}]   ;;  %s5674_s2 = inlined_call_operand.hbm [shape: f32[1,1024], index: 2, kind: input, shape index: {}]   ;;  %s5675_s3 = inlined_call_operand.vmem [shape: f32[1024,10], index: 3, kind: input, shape index: {}]   ;;  %s5676_s4 = inlined_call_operand.hbm [shape: f32[1,10], index: 4, kind: input, shape index: {}]   ;;  %s5677_s5 = inlined_call_operand.vmem [shape: f32[10,2], index: 5, kind: input, shape index: {}]   ;;  %s5678_s6 = inlined_call_operand.vmem [shape: f32[160,2], index: 6, kind: input, shape index: {}]   ;;  %s5679_s7 = inlined_call_operand.hbm [shape: f32[1,160], index: 7, kind: input, shape index: {}]   ;;  %s5680_s8 = inlined_call_operand.hbm [shape: f32[1,160], index: 8, kind: input, shape index: {}]   ;;  %s5681_s9 = inlined_call_operand.hbm [shape: f32[10,160], index: 9, kind: input, shape index: {}]   ;;  %s5682_s10 = inlined_call_operand.hbm [shape: f32[160,160], index: 10, kind: input, shape index: {}]   ;;  %s5683_s11 = inlined_call_operand.vmem [shape: f32[8,2], index: 11, kind: output, shape index: {}]  }
   0x1   :  { %5697 = sst [smem:[#allocation23_spill]] %s5672_s0 }
   0x2   :  { %5698 = sst [smem:[#allocation24_spill]] %s5673_s1 }
   0x3   :  { %5699 = sst [smem:[#allocation25_spill]] %s5676_s4 }
   0x4   :  { %5700 = sst [smem:[#allocation26_spill]] %s5677_s5 }
   0x5   :  { %5701 = sst [smem:[#allocation27_spill]] %s5678_s6 }
   0x6   :  { %5702 = sst [smem:[#allocation28_spill]] %s5680_s8 }
   0x7   :  { %5703 = sst [smem:[#allocation29_spill]] %s5683_s11 }
   0x8   :  { %16 = vsyncpa [#allocation4], 0 }
   0x9   :  { %17 = vsyncpa [#allocation6], 0 }
   0xa   :  { %19 = vsyncpa [#allocation6 + $0x1], 0 }
   0xb   :  { %20 = vsyncpa [#allocation9], 0 }
   0xc   :  { %21 = vsyncpa [#allocation12], 0 }
   0xd   :  { %22 = vsyncpa [#allocation15], 0  ;;  %s4811_s17 = smov 0   ;;  %s4813_s18 = smov 0  }
   0xe   :  { %s4815_s19 = smov 0   ;;  %s4817_s20 = smov 0  }
   0xf LB: > { %s4732_s21 = smov [#allocation8]   ;;  %s4832_s23 = sadd.s32 4294967295, %s4730_s20   ;;  %s4730_s20 = sphi %s4817_s20, %s5737_s20   ;;  %s4726_s19 = sphi %s4815_s19, %s5741_s19   ;;  %s4722_s18 = sphi %s4813_s18, %s5740_s18   ;;  %s4718_s17 = sphi %s4811_s17, %s5739_s17  }
  0x10   : > { %s324_s22 = sshll.u32 %s4732_s21, 4  ;;  %p3353_p0 = scmp.ge.s32.totalorder %s4730_s20, 1  ;;  %s325_s22 = int_to_ptr.vmem [resolvable:$true] %s324_s22 }
  0x11   : > { %p5684_p1 = scmp.eq.s32.totalorder %s4832_s23, 0  ;;  %p300_p2 = scmp.lt.s32.totalorder %s4730_s20, 5 }
  0x12   : > { %s4733_s25 = smov [#allocation11]   ;;  %s5706_s4 = sld [smem:[#allocation25_spill]] }
  0x13   : > { %p4838_p4 = pnand %p3353_p0, %p300_p2  ;;  %s352_s26 = sshll.u32 %s4733_s25, 4  ;;  %s4844_s26 = int_to_ptr.vmem [resolvable:$true] %s352_s26 }
  0x15   : > { %s5704_s24 = scalar_select %p4838_p4, 1, 0 }
  0x16   : > { %p3957_p5 = pneg %p4838_p4 }
  0x18   : > { %p4848_p6 = pnand %p3957_p5, %p5684_p1  ;;  %s4452_s30 = scalar_lea.hbm %s5706_s4, 16 }
  0x19   : > { %p4453_p7 = scmp.ne.s32.totalorder %s5706_s4, %s4452_s30  ;;  %p4459_p11 = scmp.lt.u32.totalorder %s4452_s30, %s5706_s4 }
  0x1a   : > { %s5705_s27 = scalar_select %p4848_p6, 1, 0 }
  0x1b   : > { %p4860_p8 = pneg %p4848_p6 }
  0x1d   : > { %p4455_p9 = pnand %p4860_p8, %p4453_p7 }
  0x1f   : > { %p4456_p10 = pneg %p4455_p9 }
  0x21   : > { %p4461_p12 = pnand %p4459_p11, %p4456_p10 }
  0x23   : > { %4464 = shalt.err (!%p4461_p12)
}
  0x24   : > { %s4465_s21 = scalar_lea.vmem %s325_s22, 16  ;;  %s4472_s25 = scalar_lea.vmem %s325_s22, 32 }
  0x25   : > { %p4466_p13 = scmp.ne.s32.totalorder %s325_s22, %s4465_s21  ;;  %p4473_p5 = scmp.lt.s32.totalorder %s325_s22, %s325_s22 }
  0x26   : > { %p4474_p3 = scmp.lt.s32.totalorder %s4472_s25, %s4465_s21 }
  0x27   : > { %p4468_p0 = pnand %p4466_p13, %p4860_p8 }
  0x28   : > { %p4475_p1 = por %p4474_p3, %p4473_p5 }
  0x29   : > { %p4469_p2 = pneg %p4468_p0 }
  0x2b   : > { %p4476_p4 = pnand %p4475_p1, %p4469_p2 }
  0x2d   : > { %4479 = shalt.err (!%p4476_p4)
}
  0x2e   : > { %3963 = dma.hbm_to_vmem [thread:$0]  (!%p4848_p6), %s5706_s4, 16, %s325_s22, [#allocation9]  }
  0x2f   : > { %s5708_s8 = sld [smem:[#allocation28_spill]] }
  0x35   : > { %s4480_s13 = scalar_lea.hbm %s5708_s8, 32 }
  0x36   : > { %p4481_p7 = scmp.ne.s32.totalorder %s5708_s8, %s4480_s13  ;;  %p4487_p1 = scmp.lt.u32.totalorder %s4480_s13, %s5708_s8 }
  0x38   : > { %p4483_p9 = pnand %p4481_p7, %p4860_p8 }
  0x3a   : > { %p4484_p3 = pneg %p4483_p9 }
  0x3c   : > { %p4489_p4 = pnand %p4487_p1, %p4484_p3 }
  0x3e   : > { %4492 = shalt.err (!%p4489_p4)
}
  0x3f   : > { %s4493_s22 = scalar_lea.vmem %s4844_s26, 32  ;;  %p4501_p13 = scmp.lt.s32.totalorder %s4844_s26, %s4844_s26 }
  0x40   : > { %p4494_p10 = scmp.ne.s32.totalorder %s4844_s26, %s4493_s22  ;;  %p4502_p0 = scmp.lt.s32.totalorder %s4493_s22, %s4493_s22 }
  0x42   : > { %p4496_p11 = pnand %p4494_p10, %p4860_p8  ;;  %p4503_p2 = por %p4502_p0, %p4501_p13 }
  0x44   : > { %p4497_p12 = pneg %p4496_p11 }
  0x46   : > { %p4504_p5 = pnand %p4503_p2, %p4497_p12 }
  0x48   : > { %4507 = shalt.err (!%p4504_p5)
}
  0x49   : > { %3969 = dma.hbm_to_vmem [thread:$0]  (!%p4848_p6), %s5708_s8, 32, %s4844_s26, [#allocation12]  }
  0x4a   : > { %s4900_s30 = sadd.s32 1, %s4730_s20   ;;  %s56_s12 = sadd.s32 1, %s4726_s19 }
  0x4b   : > { %5709 = sst [smem:[#allocation21_spill]] %s4900_s30  ;;  %s53_s13 = ssub.s32 %s4730_s20, %s4900_s30 }
  0x4c   : > { %p63_p7 = scmp.ne.s32.totalorder %s4726_s19, %s4722_s18  ;;  %p54_p9 = scmp.eq.s32.totalorder %s53_s13, 0 }
  0x4d   : > { %p64_p3 = scmp.eq.s32.totalorder %s4730_s20, 0  ;;  %p69_p1 = scmp.ne.s32.totalorder %s4722_s18, %s4718_s17 }
  0x4e   : > { %p3989_p4 = scmp.lt.s32.totalorder %s4730_s20, 4  ;;  %p5711_p11 = scmp.eq.s32.totalorder %s4832_s23, 0 }
  0x4f   : > { %s4912_s15 = scalar_select %p54_p9, %s4726_s19, %s56_s12  }
  0x50   : > { %p65_p10 = por %p64_p3, %p63_p7  ;;  %p4916_p12 = por %p5711_p11, %p69_p1 }
  0x51   : > { %5710 = sst [smem:[#allocation22_spill]] %s4912_s15  ;;  %s389_s21 = sand.u32 1, %s4730_s20  }
  0x52   : > { %s5712_s16 = scalar_select %p4916_p12, 1, 0 }
  0x53   : > { %s5686_s26 = sand.u32 1, %s4726_s19   ;;  %s3660_s22 = sshll.u32 %s4730_s20, 7 }
  0x54   : > { %s3927_s25 = smul.u32 2000, %s5686_s26  ;;  %p4925_p13 = pnand %p3989_p4, %p65_p10 }
  0x55   : > { %s5714_s1 = sld [smem:[#allocation24_spill]]  ;;  %s4936_s26 = scalar_lea.sflag [#allocation6], %s389_s21 }
  0x56   : > { %s5713_s28 = scalar_select %p4925_p13, 1, 0 }
  0x57   : > { %s393_s13 = scalar_lea.vmem [#allocation5], %s3927_s25  ;;  %p5694_p2 = pneg %p4925_p13 }
  0x58   : > { %s400_s4 = sshll.u32 %s393_s13, 4  ;;  %s4934_s4 = int_to_ptr.vmem [resolvable:$true] %s400_s4 }
  0x5b   : > { %s4932_s12 = scalar_lea.hbm %s5714_s1, %s3660_s22  ;;  %s4513_s17 = scalar_lea.hbm %s5714_s1, 128000 }
  0x5c   : > { %s4508_s8 = scalar_lea.hbm %s4932_s12, 32000  ;;  %p4514_p9 = scmp.lt.u32.totalorder %s4932_s12, %s5714_s1 }
  0x5d   : > { %p4509_p0 = scmp.ne.s32.totalorder %s4932_s12, %s4508_s8  ;;  %p4515_p3 = scmp.lt.u32.totalorder %s4513_s17, %s4508_s8 }
  0x5e   : > { %p4517_p4 = scmp.lt.u32.totalorder %s4508_s8, %s4932_s12 }
  0x5f   : > { %p4511_p5 = pnand %p5694_p2, %p4509_p0  ;;  %p4516_p1 = por %p4515_p3, %p4514_p9 }
  0x61   : > { %p4512_p7 = pneg %p4511_p5  ;;  %p4518_p10 = por %p4517_p4, %p4516_p1 }
  0x63   : > { %p4519_p11 = pnand %p4518_p10, %p4512_p7 }
  0x65   : > { %4522 = shalt.err (!%p4519_p11)
}
  0x66   : > { %s4523_s21 = scalar_lea.vmem %s4934_s4, 32000  ;;  %s4734_s25 = smov [#allocation5]  }
  0x67   : > { %p4524_p0 = scmp.ne.s32.totalorder %s4934_s4, %s4523_s21  ;;  %s4528_s13 = sshll.u32 %s4734_s25, 4  ;;  %s4529_s13 = int_to_ptr.vmem [resolvable:$false] %s4528_s13 }
  0x68   : > { %s4530_s30 = scalar_lea.vmem %s4529_s13, 64000  ;;  %p4531_p6 = scmp.lt.s32.totalorder %s4934_s4, %s4529_s13 }
  0x69   : > { %p4526_p5 = pnand %p4524_p0, %p5694_p2  ;;  %p4532_p9 = scmp.lt.s32.totalorder %s4530_s30, %s4523_s21 }
  0x6b   : > { %p4527_p12 = pneg %p4526_p5  ;;  %p4533_p3 = por %p4532_p9, %p4531_p6 }
  0x6d   : > { %p4534_p1 = pnand %p4533_p3, %p4527_p12 }
  0x6f   : > { %4537 = shalt.err (!%p4534_p1)
}
  0x70   : > { %s4735_s8 = smov 512   ;;  %s4736_s15 = smov 128  }
  0x71   : > { %s4737_s22 = smov 8   ;;  %s4738_s29 = smov [#allocation3]  }
  0x72   : > { %3979 = dma.hbm_to_vmem [thread:$0]  (!%p4925_p13), %s4932_s12, 32000, %s4934_s4, %s4936_s26, %s4735_s8, %s4736_s15, %s4737_s22  }
  0x73   : > { %s313_s17 = sshll.u32 %s4738_s29, 4  ;;  %s4739_s25 = smov [#allocation10]   ;;  %s314_s17 = int_to_ptr.vmem [resolvable:$true] %s313_s17 }
  0x74   : > { %s341_s1 = sshll.u32 %s4739_s25, 4  ;;  %s5715_s0 = sld [smem:[#allocation23_spill]]  ;;  %s4964_s1 = int_to_ptr.vmem [resolvable:$true] %s341_s1 }
  0x7a   : > { %s4538_s30 = scalar_lea.hbm %s5715_s0, 1024 }
  0x7b   : > { %p4539_p6 = scmp.ne.s32.totalorder %s5715_s0, %s4538_s30  ;;  %p4545_p4 = scmp.lt.u32.totalorder %s4538_s30, %s5715_s0 }
  0x7d   : > { %p4541_p12 = pnand %p4539_p6, %p4860_p8 }
  0x7f   : > { %p4542_p7 = pneg %p4541_p12 }
  0x81   : > { %p4547_p10 = pnand %p4545_p4, %p4542_p7 }
  0x83   : > { %4550 = shalt.err (!%p4547_p10)
}
  0x84   : > { %s4551_s12 = scalar_lea.vmem %s314_s17, 1024  ;;  %p4559_p9 = scmp.lt.s32.totalorder %s314_s17, %s314_s17 }
  0x85   : > { %p4552_p11 = scmp.ne.s32.totalorder %s314_s17, %s4551_s12  ;;  %p4560_p3 = scmp.lt.s32.totalorder %s4551_s12, %s4551_s12 }
  0x87   : > { %p4554_p0 = pnand %p4552_p11, %p4860_p8  ;;  %p4561_p1 = por %p4560_p3, %p4559_p9 }
  0x89   : > { %p4555_p5 = pneg %p4554_p0 }
  0x8b   : > { %p4562_p2 = pnand %p4561_p1, %p4555_p5 }
  0x8d   : > { %4565 = shalt.err (!%p4562_p2)
}
  0x8e   : > { %p5716_p6 = scmp.ne.s32.totalorder %s5705_s27, 0  ;;  %s4566_s15 = scalar_lea.hbm %s5679_s7, 32 }
  0x8f   : > { %p4567_p12 = scmp.ne.s32.totalorder %s5679_s7, %s4566_s15  ;;  %p4573_p2 = scmp.lt.u32.totalorder %s4566_s15, %s5679_s7 }
  0x90   : > { %3960 = dma.hbm_to_vmem [thread:$0]  (!%p5716_p6), %s5715_s0, 1024, %s314_s17, [#allocation4]  }
  0x91   : > { %p4569_p7 = pnand %p4567_p12, %p4860_p8 }
  0x93   : > { %p4570_p4 = pneg %p4569_p7 }
  0x95   : > { %p4575_p10 = pnand %p4573_p2, %p4570_p4 }
  0x97   : > { %4578 = shalt.err (!%p4575_p10)
}
  0x98   : > { %s4579_s17 = scalar_lea.vmem %s4964_s1, 32  ;;  %p4587_p9 = scmp.lt.s32.totalorder %s4964_s1, %s4964_s1 }
  0x99   : > { %p4580_p11 = scmp.ne.s32.totalorder %s4964_s1, %s4579_s17  ;;  %p4588_p3 = scmp.lt.s32.totalorder %s4579_s17, %s4579_s17 }
  0x9b   : > { %p4582_p0 = pnand %p4580_p11, %p4860_p8  ;;  %p4589_p1 = por %p4588_p3, %p4587_p9 }
  0x9d   : > { %p4583_p5 = pneg %p4582_p0 }
  0x9f   : > { %p4590_p12 = pnand %p4589_p1, %p4583_p5 }
  0xa1   : > { %4593 = shalt.err (!%p4590_p12)
}
  0xa2   : > { %3966 = dma.hbm_to_vmem [thread:$0]  (!%p5716_p6), %s5679_s7, 32, %s4964_s1, [#allocation9]  }
  0xa3   : > { %s4740_s4 = smov [#allocation13]   ;;  %s4594_s6 = scalar_lea.hbm %s5681_s9, 512 }
  0xa4   : > { %s362_s12 = sshll.u32 %s4740_s4, 4  ;;  %p4595_p7 = scmp.ne.s32.totalorder %s5681_s9, %s4594_s6  ;;  %s363_s12 = int_to_ptr.vmem [resolvable:$true] %s362_s12 }
  0xa5   : > { %p4601_p10 = scmp.lt.u32.totalorder %s4594_s6, %s5681_s9 }
  0xa6   : > { %p4597_p4 = pnand %p4595_p7, %p4860_p8 }
  0xa8   : > { %p4598_p2 = pneg %p4597_p4 }
  0xaa   : > { %p4603_p11 = pnand %p4601_p10, %p4598_p2 }
  0xac   : > { %4606 = shalt.err (!%p4603_p11)
}
  0xad   : > { %s4607_s1 = scalar_lea.vmem %s363_s12, 512  ;;  %p4615_p3 = scmp.lt.s32.totalorder %s363_s12, %s363_s12 }
  0xae   : > { %p4608_p0 = scmp.ne.s32.totalorder %s363_s12, %s4607_s1  ;;  %p4616_p1 = scmp.lt.s32.totalorder %s4607_s1, %s4607_s1 }
  0xb0   : > { %p4610_p5 = pnand %p4608_p0, %p4860_p8  ;;  %p4617_p12 = por %p4616_p1, %p4615_p3 }
  0xb2   : > { %p4611_p9 = pneg %p4610_p5 }
  0xb4   : > { %p4618_p13 = pnand %p4617_p12, %p4611_p9 }
  0xb6   : > { %4621 = shalt.err (!%p4618_p13)
}
  0xb7   : > { %s4741_s25 = smov 256   ;;  %s4742_s21 = smov 16  }
  0xb8   : > { %3972 = dma.hbm_to_vmem [thread:$0]  (!%p5716_p6), %s5681_s9, 512, %s363_s12, [#allocation12], %s4741_s25, %s4741_s25, %s4742_s21  }
  0xb9   : > { %s4743_s30 = smov [#allocation14]   ;;  %s5717_s5 = sand.u32 1, %s4726_s19  }
  0xba   : > { %s375_s4 = sshll.u32 %s4743_s30, 4  ;;  %s3363_s11 = sshll.u32 %s5717_s5, 1  ;;  %s376_s4 = int_to_ptr.vmem [resolvable:$true] %s375_s4 }
  0xbb   : > { %s4622_s15 = scalar_lea.hbm %s5682_s10, 5120 }
  0xbc   : > { %p4623_p13 = scmp.ne.s32.totalorder %s5682_s10, %s4622_s15  ;;  %p4629_p2 = scmp.lt.u32.totalorder %s4622_s15, %s5682_s10 }
  0xbe   : > { %p4625_p7 = pnand %p4623_p13, %p4860_p8 }
  0xc0   : > { %p4626_p4 = pneg %p4625_p7 }
  0xc2   : > { %p4631_p10 = pnand %p4629_p2, %p4626_p4 }
  0xc4   : > { %4634 = shalt.err (!%p4631_p10)
}
  0xc5   : > { %s4635_s12 = scalar_lea.vmem %s376_s4, 5120  ;;  %p4643_p9 = scmp.lt.s32.totalorder %s376_s4, %s376_s4 }
  0xc6   : > { %p4636_p11 = scmp.ne.s32.totalorder %s376_s4, %s4635_s12  ;;  %p4644_p3 = scmp.lt.s32.totalorder %s4635_s12, %s4635_s12 }
  0xc8   : > { %p4638_p0 = pnand %p4636_p11, %p4860_p8  ;;  %p4645_p1 = por %p4644_p3, %p4643_p9 }
  0xca   : > { %p4639_p5 = pneg %p4638_p0 }
  0xcc   : > { %p4646_p12 = pnand %p4645_p1, %p4639_p5 }
  0xce   : > { %4649 = shalt.err (!%p4646_p12)
}
  0xcf   : > { %3975 = dma.hbm_to_vmem [thread:$0]  (!%p5716_p6), %s5682_s10, 5120, %s376_s4, [#allocation15], %s4741_s25, %s4741_s25, %s4742_s21  }
  0xd0   : > { %s3661_s0 = sshll.u32 %s4730_s20, 5  ;;  %s414_s30 = scalar_lea.vmem [#allocation7], %s3363_s11 }
  0xd1   : > { %s422_s5 = sshll.u32 %s414_s30, 4  ;;  %s420_s8 = scalar_lea.hbm %s5674_s2, %s3661_s0  ;;  %s423_s5 = int_to_ptr.vmem [resolvable:$true] %s422_s5 }
  0xd2   : > { %s4650_s15 = scalar_lea.hbm %s420_s8, 32  ;;  %p5718_p13 = scmp.ne.s32.totalorder %s5713_s28, 0 }
  0xd3   : > { %p4651_p8 = scmp.ne.s32.totalorder %s420_s8, %s4650_s15  ;;  %s4655_s29 = scalar_lea.hbm %s5674_s2, 128 }
  0xd4   : > { %p5719_p7 = pneg %p5718_p13  ;;  %p4656_p6 = scmp.lt.u32.totalorder %s420_s8, %s5674_s2 }
  0xd5   : > { %p4657_p10 = scmp.lt.u32.totalorder %s4655_s29, %s4650_s15  ;;  %p4659_p0 = scmp.lt.u32.totalorder %s4650_s15, %s420_s8 }
  0xd6   : > { %p4653_p4 = pnand %p4651_p8, %p5719_p7 }
  0xd7   : > { %p4658_p11 = por %p4657_p10, %p4656_p6 }
  0xd8   : > { %p4654_p2 = pneg %p4653_p4 }
  0xd9   : > { %p4660_p5 = por %p4659_p0, %p4658_p11 }
  0xdb   : > { %p4661_p9 = pnand %p4660_p5, %p4654_p2 }
  0xdd   : > { %4664 = shalt.err (!%p4661_p9)
}
  0xde   : > { %s4665_s20 = scalar_lea.vmem %s423_s5, 32  ;;  %p5720_p1 = pmov %p5719_p7 }
  0xdf   : > { %p4666_p3 = scmp.ne.s32.totalorder %s423_s5, %s4665_s20  ;;  %s4744_s21 = smov [#allocation7]  }
  0xe0   : > { %s4670_s4 = sshll.u32 %s4744_s21, 4  ;;  %s4671_s4 = int_to_ptr.vmem [resolvable:$false] %s4670_s4 }
  0xe1   : > { %p4668_p12 = pnand %p4666_p3, %p5720_p1  ;;  %s4672_s11 = scalar_lea.vmem %s4671_s4, 64 }
  0xe2   : > { %p4673_p7 = scmp.lt.s32.totalorder %s423_s5, %s4671_s4  ;;  %p4674_p4 = scmp.lt.s32.totalorder %s4672_s11, %s4665_s20 }
  0xe3   : > { %p4669_p8 = pneg %p4668_p12 }
  0xe4   : > { %p4675_p6 = por %p4674_p4, %p4673_p7 }
  0xe6   : > { %p4676_p10 = pnand %p4675_p6, %p4669_p8 }
  0xe8   : > { %4679 = shalt.err (!%p4676_p10)
}
  0xe9   : > { %3982 = dma.hbm_to_vmem [thread:$0]  (!%p5718_p13), %s420_s8, 32, %s423_s5, %s4936_s26  }
  0xea   : > { %p5721_p2 = scmp.ne.s32.totalorder %s5704_s24, 0 }
  0xeb   : > { %p5722_p11 = scmp.eq.s32.totalorder (!%p5721_p2), %s4832_s23, 0 }
  0xec   : > { %440 = sbr.rel (%p5721_p2) target bundleno = 2122 (0x84a), region = 64 }
  0xf3   : > { %4697 = dma.done.wait (%p5722_p11), [#allocation4], 1024   ;;  %p5723_p0 = pmov %p5722_p11 }
  0xf4   : > { %s446_s12 = sand.u32 1, %s4832_s23   ;;  %s448_s17 = sand.u32 1, %s4722_s18  }
  0xf5   : > { %4699 = vsyncadd (%p5723_p0), [#allocation4], 4294966272  ;;  %s3928_s13 = smul.u32 2000, %s448_s17  ;;  %s447_s0 = scalar_lea.sflag [#allocation6], %s446_s12 }
  0xf6   : > { %p5724_p5 = scmp.ne.s32.totalorder %s5712_s16, 0 }
  0xf7   : > { %s5072_s30 = scalar_lea.vmem [#allocation5], %s3928_s13 }
  0xf8   : > { %4701 = dma.done.wait (%p5724_p5), %s447_s0, 32032  }
  0xf9   : > { %4703 = vsyncadd (%p5724_p5), %s447_s0, 4294935264  ;;  %s5078_s24 = sshll.u32 %s448_s17, 1  ;;  %p5725_p13 = pmov %p5723_p0 }
  0xfa   : > { %s459_s26 = scalar_lea.vmem [#allocation7], %s5078_s24 }
  0xfb   : > { %4705 = dma.done.wait (%p5725_p13), [#allocation9], 48   ;;  %p5726_p9 = pmov %p5723_p0 }
  0xfc   : > { %p5727_p3 = pmov %p5723_p0 }
  0xfd   : > { %4707 = vsyncadd (%p5726_p9), [#allocation9], 4294967248 }
  0xfe   : > { %4709 = dma.done.wait (%p5727_p3), [#allocation12], 544   ;;  %p5728_p1 = pmov %p5723_p0 }
  0xff   : > { %p5729_p12 = pmov %p5723_p0 }
 0x100   : > { %4711 = vsyncadd (%p5728_p1), [#allocation12], 4294966752 }
 0x101   : > { %4713 = dma.done.wait (%p5729_p12), [#allocation15], 5120   ;;  %p5730_p8 = pmov %p5723_p0 }
 0x102   : > { %s3374_s16 = sshll.u32 %s4832_s23, 5  ;;  %p5731_p4 = scmp.ne.s32.totalorder %s4832_s23, 0 }
 0x103   : > { %4715 = vsyncadd (%p5730_p8), [#allocation15], 4294962176  ;;  %p526_p7 = scmp.lt.s32.totalorder %s3374_s16, 127  ;;  %vm536_vm0 = vcmask (!%p5731_p4), 80896   ;;  %v4745_v0 = vmov (!%p5731_p4), 0.0  }
 0x104   : > { %535 = sbr.rel (%p5731_p4) target bundleno = 267 (0x10b), region = 100  ;;  %537 = vst.msk [vmem:[#allocation2] sm:$0xff] (!%p5731_p4), %vm536_vm0, %v4745_v0 }
 0x105   : > { %s5743_s16 = smov (!%p526_p7, %s3374_s16), 127 }
 0x106   : > { %s3375_s28 = sshll.u32 %s5743_s16, 3 }
 0x107   : > { %s5097_s14 = scalar_lea.vmem %s5675_s3, %s3375_s28 }
 0x10b PF: > { %v4045_v1 = vld [vmem:[%s5072_s30 + $0x4] ss:$8 sps:$4 sm:$0xff]   ;;  %v4049_v3 = vld [vmem:[%s5072_s30] ss:$8 sps:$4 sm:$0xff]   ;;  %v4051_v5 = vld [vmem:[%s5072_s30 + $0x14] ss:$8 sps:$4 sm:$0xff]  }
 0x10c   : > { %v4047_v2 = vld [vmem:[%s5072_s30 + $0x304] ss:$8 sps:$4 sm:$0xff]   ;;  %2117 = vmatprep.subr.bf16.mxu1 %v4045_v1  ;;  %v4050_v4 = vld [vmem:[%s5072_s30 + $0x300] ss:$8 sps:$4 sm:$0xff]   ;;  %v4053_v6 = vld [vmem:[%s5072_s30 + $0x314] ss:$8 sps:$4 sm:$0xff]  }
 0x10d   : > { %2240 = vmatprep.subr.bf16.mxu0 %v4047_v2  ;;  %2118 = vmatpush1.bf16.msra.mxu1 %v4049_v3  ;;  %v4055_v7 = vld [vmem:[%s5072_s30 + $0x10] ss:$8 sps:$4 sm:$0xff]   ;;  %v4057_v9 = vld [vmem:[%s5072_s30 + $0x24] ss:$8 sps:$4 sm:$0xff]   ;;  %v4061_v11 = vld [vmem:[%s5072_s30 + $0x20] ss:$8 sps:$4 sm:$0xff]  }
 0x10e   : > { %2241 = vmatpush1.bf16.msra.mxu0 %v4050_v4  ;;  %2119 = vmatprep.subr.bf16.mxu1 %v4051_v5  ;;  %v4056_v8 = vld [vmem:[%s5072_s30 + $0x310] ss:$8 sps:$4 sm:$0xff]   ;;  %v4059_v10 = vld [vmem:[%s5072_s30 + $0x324] ss:$8 sps:$4 sm:$0xff]   ;;  %v4062_v12 = vld [vmem:[%s5072_s30 + $0x320] ss:$8 sps:$4 sm:$0xff]  }
 0x10f   : > { %2242 = vmatprep.subr.bf16.mxu0 %v4053_v6  ;;  %v4063_v13 = vld [vmem:[%s5072_s30 + $0x34] ss:$8 sps:$4 sm:$0xff]   ;;  %v4067_v15 = vld [vmem:[%s5072_s30 + $0x30] ss:$8 sps:$4 sm:$0xff]   ;;  %v4069_v17 = vld [vmem:[%s5072_s30 + $0x44] ss:$8 sps:$4 sm:$0xff]  }
 0x110   : > { %v4065_v14 = vld [vmem:[%s5072_s30 + $0x334] ss:$8 sps:$4 sm:$0xff]   ;;  %v4068_v16 = vld [vmem:[%s5072_s30 + $0x330] ss:$8 sps:$4 sm:$0xff]   ;;  %v4071_v18 = vld [vmem:[%s5072_s30 + $0x344] ss:$8 sps:$4 sm:$0xff]  }
 0x111   : > { %2120 = vmatpush1.bf16.msra.mxu1 %v4055_v7  ;;  %v4073_v19 = vld [vmem:[%s5072_s30 + $0x40] ss:$8 sps:$4 sm:$0xff]   ;;  %v4075_v21 = vld [vmem:[%s5072_s30 + $0x54] ss:$8 sps:$4 sm:$0xff]   ;;  %v4079_v23 = vld [vmem:[%s5072_s30 + $0x50] ss:$8 sps:$4 sm:$0xff]  }
 0x112   : > { %2243 = vmatpush1.bf16.msra.mxu0 %v4056_v8  ;;  %2121 = vmatprep.subr.bf16.mxu1 %v4057_v9  ;;  %v4074_v20 = vld [vmem:[%s5072_s30 + $0x340] ss:$8 sps:$4 sm:$0xff]   ;;  %v4077_v22 = vld [vmem:[%s5072_s30 + $0x354] ss:$8 sps:$4 sm:$0xff]   ;;  %v4080_v24 = vld [vmem:[%s5072_s30 + $0x350] ss:$8 sps:$4 sm:$0xff]  }
 0x113   : > { %2244 = vmatprep.subr.bf16.mxu0 %v4059_v10  ;;  %v4081_v25 = vld [vmem:[%s5072_s30 + $0x64] ss:$8 sps:$4 sm:$0xff]   ;;  %v4085_v27 = vld [vmem:[%s5072_s30 + $0x60] ss:$8 sps:$4 sm:$0xff]   ;;  %v4087_v29 = vld [vmem:[%s5072_s30 + $0x74] ss:$8 sps:$4 sm:$0xff]  }
 0x114   : > { %v4083_v26 = vld [vmem:[%s5072_s30 + $0x364] ss:$8 sps:$4 sm:$0xff]   ;;  %v4086_v28 = vld [vmem:[%s5072_s30 + $0x360] ss:$8 sps:$4 sm:$0xff]   ;;  %v4089_v30 = vld [vmem:[%s5072_s30 + $0x374] ss:$8 sps:$4 sm:$0xff]  }
 0x115   : > { %2122 = vmatpush1.bf16.msra.mxu1 %v4061_v11  ;;  %v4091_v31 = vld [vmem:[%s5072_s30 + $0x70] ss:$8 sps:$4 sm:$0xff]   ;;  %v4093_v33 = vld [vmem:[%s5072_s30 + $0x84] ss:$8 sps:$4 sm:$0xff]   ;;  %v4097_v35 = vld [vmem:[%s5072_s30 + $0x80] ss:$8 sps:$4 sm:$0xff]  }
 0x116   : > { %2245 = vmatpush1.bf16.msra.mxu0 %v4062_v12  ;;  %2123 = vmatprep.subr.bf16.mxu1 %v4063_v13  ;;  %v4092_v32 = vld [vmem:[%s5072_s30 + $0x370] ss:$8 sps:$4 sm:$0xff]   ;;  %v4095_v34 = vld [vmem:[%s5072_s30 + $0x384] ss:$8 sps:$4 sm:$0xff]   ;;  %v4098_v36 = vld [vmem:[%s5072_s30 + $0x380] ss:$8 sps:$4 sm:$0xff]  }
 0x117   : > { %2246 = vmatprep.subr.bf16.mxu0 %v4065_v14  ;;  %v4099_v37 = vld [vmem:[%s5072_s30 + $0x94] ss:$8 sps:$4 sm:$0xff]   ;;  %v4103_v39 = vld [vmem:[%s5072_s30 + $0x90] ss:$8 sps:$4 sm:$0xff]   ;;  %v4105_v41 = vld [vmem:[%s5072_s30 + $0xa4] ss:$8 sps:$4 sm:$0xff]  }
 0x118   : > { %v4101_v38 = vld [vmem:[%s5072_s30 + $0x394] ss:$8 sps:$4 sm:$0xff]   ;;  %v4104_v40 = vld [vmem:[%s5072_s30 + $0x390] ss:$8 sps:$4 sm:$0xff]   ;;  %v4107_v42 = vld [vmem:[%s5072_s30 + $0x3a4] ss:$8 sps:$4 sm:$0xff]  }
 0x119   : > { %2124 = vmatpush1.bf16.msra.mxu1 %v4067_v15  ;;  %v4109_v43 = vld [vmem:[%s5072_s30 + $0xa0] ss:$8 sps:$4 sm:$0xff]   ;;  %v4111_v45 = vld [vmem:[%s5072_s30 + $0xb4] ss:$8 sps:$4 sm:$0xff]   ;;  %v4115_v48 = vld [vmem:[%s5072_s30 + $0xb0] ss:$8 sps:$4 sm:$0xff]  }
 0x11a   : > { %2247 = vmatpush1.bf16.msra.mxu0 %v4068_v16  ;;  %2125 = vmatprep.subr.bf16.mxu1 %v4069_v17  ;;  %v4110_v44 = vld [vmem:[%s5072_s30 + $0x3a0] ss:$8 sps:$4 sm:$0xff]   ;;  %v4113_v46 = vld [vmem:[%s5072_s30 + $0x3b4] ss:$8 sps:$4 sm:$0xff]   ;;  %v4116_v50 = vld [vmem:[%s5072_s30 + $0x3b0] ss:$8 sps:$4 sm:$0xff]  }
 0x11b   : > { %2248 = vmatprep.subr.bf16.mxu0 %v4071_v18  ;;  %v538_v47 = vld [vmem:[#allocation3] sm:$0xff]  ;;  %v541_v51 = vld [vmem:[#allocation3 + $0x18] sm:$0xff]  ;;  %vm2113_vm1 = vcmask 654336   ;;  %vm2563_vm2 = vcmask 80896   ;;  %p3644_p6 = scmp.ne.s32.totalorder %s4832_s23, 3 }
 0x11c   : > { %v3378_v49 = vcombine.high %v538_v47, %v538_v47  ;;  %v4117_v52 = vld [vmem:[%s5072_s30 + $0xc4] ss:$8 sps:$4 sm:$0xff]   ;;  %v3384_v54 = vcombine.high %v541_v51, %v541_v51  ;;  %v4121_v55 = vld [vmem:[%s5072_s30 + $0xc0] ss:$8 sps:$4 sm:$0xff]   ;;  %v4123_v57 = vld [vmem:[%s5072_s30 + $0xd4] ss:$8 sps:$4 sm:$0xff]   ;;  %v3377_v7 = vcombine.low %v538_v47, %v538_v47  ;;  %v3383_v8 = vcombine.low %v541_v51, %v541_v51 }
 0x11d   : > { %2126 = vmatpush1.bf16.msra.mxu1 %v4073_v19  ;;  %v4119_v53 = vld [vmem:[%s5072_s30 + $0x3c4] ss:$8 sps:$4 sm:$0xff]   ;;  %v4122_v56 = vld [vmem:[%s5072_s30 + $0x3c0] ss:$8 sps:$4 sm:$0xff]   ;;  %v4125_v58 = vld [vmem:[%s5072_s30 + $0x3d4] ss:$8 sps:$4 sm:$0xff]  }
 0x11e   : > { %2249 = vmatpush1.bf16.msra.mxu0 %v4074_v20  ;;  %2127 = vmatprep.subr.bf16.mxu1 %v4075_v21  ;;  %v4127_v59 = vld [vmem:[%s5072_s30 + $0xd0] ss:$8 sps:$4 sm:$0xff]   ;;  %v4129_v61 = vld [vmem:[%s5072_s30 + $0xe4] ss:$8 sps:$4 sm:$0xff]   ;;  %v4133_v63 = vld [vmem:[%s5072_s30 + $0xe0] ss:$8 sps:$4 sm:$0xff]  }
 0x11f   : > { %2250 = vmatprep.subr.bf16.mxu0 %v4077_v22  ;;  %2149 = vmatprep.mubr.bf16.mxu1 %v3378_v49  ;;  %v4128_v60 = vld [vmem:[%s5072_s30 + $0x3d0] ss:$8 sps:$4 sm:$0xff]   ;;  %v4131_v62 = vld [vmem:[%s5072_s30 + $0x3e4] ss:$8 sps:$4 sm:$0xff]   ;;  %v4134_v0 = vld [vmem:[%s5072_s30 + $0x3e0] ss:$8 sps:$4 sm:$0xff]  }
 0x120   : > { %2272 = vmatprep.mubr.bf16.mxu0 %v3384_v54  ;;  %v4135_v1 = vld [vmem:[%s5072_s30 + $0xf4] ss:$8 sps:$4 sm:$0xff]   ;;  %v4139_v3 = vld [vmem:[%s5072_s30 + $0xf0] ss:$8 sps:$4 sm:$0xff]   ;;  %v4145_v5 = vld [vmem:[%s5072_s30 + $0x104] ss:$8 sps:$4 sm:$0xff]  }
 0x121   : > { %2128 = vmatpush1.bf16.msra.mxu1 %v4079_v23  ;;  %v4137_v2 = vld [vmem:[%s5072_s30 + $0x3f4] ss:$8 sps:$4 sm:$0xff]   ;;  %v4140_v4 = vld [vmem:[%s5072_s30 + $0x3f0] ss:$8 sps:$4 sm:$0xff]   ;;  %v4150_v6 = vld [vmem:[%s5072_s30 + $0x404] ss:$8 sps:$4 sm:$0xff]  }
 0x122   : > { %2251 = vmatpush1.bf16.msra.mxu0 %v4080_v24  ;;  %2129 = vmatprep.subr.bf16.mxu1 %v4081_v25  ;;  %v4143_v9 = vld [vmem:[%s5072_s30 + $0x100] ss:$8 sps:$4 sm:$0xff]   ;;  %v4153_v11 = vld [vmem:[%s5072_s30 + $0x114] ss:$8 sps:$4 sm:$0xff]   ;;  %v4151_v13 = vld [vmem:[%s5072_s30 + $0x110] ss:$8 sps:$4 sm:$0xff]  }
 0x123   : > { %2252 = vmatprep.subr.bf16.mxu0 %v4083_v26  ;;  %v4148_v10 = vld [vmem:[%s5072_s30 + $0x400] ss:$8 sps:$4 sm:$0xff]   ;;  %v4156_v12 = vld [vmem:[%s5072_s30 + $0x414] ss:$8 sps:$4 sm:$0xff]   ;;  %v4154_v14 = vld [vmem:[%s5072_s30 + $0x410] ss:$8 sps:$4 sm:$0xff]  }
 0x124   : > { %v4159_v15 = vld [vmem:[%s5072_s30 + $0x124] ss:$8 sps:$4 sm:$0xff]   ;;  %v4157_v17 = vld [vmem:[%s5072_s30 + $0x120] ss:$8 sps:$4 sm:$0xff]   ;;  %v4165_v19 = vld [vmem:[%s5072_s30 + $0x134] ss:$8 sps:$4 sm:$0xff]  }
 0x125   : > { %2130 = vmatpush1.bf16.msra.mxu1 %v4085_v27  ;;  %v4162_v16 = vld [vmem:[%s5072_s30 + $0x424] ss:$8 sps:$4 sm:$0xff]   ;;  %v4160_v18 = vld [vmem:[%s5072_s30 + $0x420] ss:$8 sps:$4 sm:$0xff]   ;;  %v4168_v20 = vld [vmem:[%s5072_s30 + $0x434] ss:$8 sps:$4 sm:$0xff]  }
 0x126   : > { %2253 = vmatpush1.bf16.msra.mxu0 %v4086_v28  ;;  %2131 = vmatprep.subr.bf16.mxu1 %v4087_v29  ;;  %v4163_v21 = vld [vmem:[%s5072_s30 + $0x130] ss:$8 sps:$4 sm:$0xff]   ;;  %v4171_v23 = vld [vmem:[%s5072_s30 + $0x144] ss:$8 sps:$4 sm:$0xff]   ;;  %v4169_v25 = vld [vmem:[%s5072_s30 + $0x140] ss:$8 sps:$4 sm:$0xff]  }
 0x127   : > { %2254 = vmatprep.subr.bf16.mxu0 %v4089_v30  ;;  %v4166_v22 = vld [vmem:[%s5072_s30 + $0x430] ss:$8 sps:$4 sm:$0xff]   ;;  %v4174_v24 = vld [vmem:[%s5072_s30 + $0x444] ss:$8 sps:$4 sm:$0xff]   ;;  %v4172_v26 = vld [vmem:[%s5072_s30 + $0x440] ss:$8 sps:$4 sm:$0xff]  }
 0x128   : > { %v4177_v27 = vld [vmem:[%s5072_s30 + $0x154] ss:$8 sps:$4 sm:$0xff]   ;;  %v4175_v29 = vld [vmem:[%s5072_s30 + $0x150] ss:$8 sps:$4 sm:$0xff]   ;;  %v4207_v51 = vld [vmem:[%s5072_s30 + $0x1a4] ss:$8 sps:$4 sm:$0xff]  }
 0x129   : > { %2132 = vmatpush1.bf16.msra.mxu1 %v4091_v31  ;;  %v4180_v28 = vld [vmem:[%s5072_s30 + $0x454] ss:$8 sps:$4 sm:$0xff]   ;;  %v4178_v30 = vld [vmem:[%s5072_s30 + $0x450] ss:$8 sps:$4 sm:$0xff]   ;;  %v4183_v31 = vld [vmem:[%s5072_s30 + $0x164] ss:$8 sps:$4 sm:$0xff]  }
 0x12a   : > { %2255 = vmatpush1.bf16.msra.mxu0 %v4092_v32  ;;  %2133 = vmatprep.subr.bf16.mxu1 %v4093_v33  ;;  %v4186_v32 = vld [vmem:[%s5072_s30 + $0x464] ss:$8 sps:$4 sm:$0xff]   ;;  %v4201_v47 = vld [vmem:[%s5072_s30 + $0x194] ss:$8 sps:$4 sm:$0xff]   ;;  %v4199_v49 = vld [vmem:[%s5072_s30 + $0x190] ss:$8 sps:$4 sm:$0xff]  }
 0x12b   : > { %2256 = vmatprep.subr.bf16.mxu0 %v4095_v34  ;;  %v5191_v33 = vld [vmem:[#allocation3 + $0x8] sm:$0xff]  ;;  %vm2601_vm3 = vcmask (!%p3644_p6), 1041408   ;;  %vm4746_vm4 = vmmov (!%p3644_p6), 1   ;;  %vm2773_vm6 = vcmask (!%p3644_p6), 261120   ;;  %s5734_s15 = sld [smem:[#allocation27_spill]] (!%p3644_p6)  ;;  %s5735_s28 = sld [smem:[#allocation26_spill]] (!%p3644_p6) }
 0x12c   : > { %v4181_v34 = vld [vmem:[%s5072_s30 + $0x160] ss:$8 sps:$4 sm:$0xff]   ;;  %vm5429_vm5 = vmpackc.low (!%p3644_p6), %vm2601_vm3, %vm4746_vm4  ;;  %vm4750_vm13 = vmmov (!%p3644_p6), 0   ;;  %vm3219_vm14 = vcmask (!%p3644_p6), 15360   ;;  %s5736_s8 = sld [smem:[#allocation29_spill]] (!%p3644_p6) }
 0x12d   : > { %2134 = vmatpush1.bf16.msra.mxu1 %v4097_v35  ;;  %v4184_v35 = vld [vmem:[%s5072_s30 + $0x460] ss:$8 sps:$4 sm:$0xff]  }
 0x12e   : > { %2257 = vmatpush1.bf16.msra.mxu0 %v4098_v36  ;;  %2135 = vmatprep.subr.bf16.mxu1 %v4099_v37  ;;  %v3380_v36 = vcombine.high %v5191_v33, %v5191_v33  ;;  %v5197_v37 = vld [vmem:[#allocation3 + $0x20] sm:$0xff] }
 0x12f   : > { %2258 = vmatprep.subr.bf16.mxu0 %v4101_v38  ;;  %v4189_v38 = vld [vmem:[%s5072_s30 + $0x174] ss:$8 sps:$4 sm:$0xff]   ;;  %v4208_v54 = vld [vmem:[%s5072_s30 + $0x4a0] ss:$8 sps:$4 sm:$0xff]  }
 0x131   : > { %2136 = vmatpush1.bf16.msra.mxu1 %v4103_v39  ;;  %v3386_v39 = vcombine.high %v5197_v37, %v5197_v37 }
 0x132   : > { %2259 = vmatpush1.bf16.msra.mxu0 %v4104_v40  ;;  %2137 = vmatprep.subr.bf16.mxu1 %v4105_v41  ;;  %v4192_v40 = vld [vmem:[%s5072_s30 + $0x474] ss:$8 sps:$4 sm:$0xff]   ;;  %v4187_v41 = vld [vmem:[%s5072_s30 + $0x170] ss:$8 sps:$4 sm:$0xff]  }
 0x133   : > { %2260 = vmatprep.subr.bf16.mxu0 %v4107_v42  ;;  %v4190_v42 = vld [vmem:[%s5072_s30 + $0x470] ss:$8 sps:$4 sm:$0xff]  }
 0x135   : > { %2138 = vmatpush1.bf16.msra.mxu1 %v4109_v43  ;;  %v4195_v43 = vld [vmem:[%s5072_s30 + $0x184] ss:$8 sps:$4 sm:$0xff]  }
 0x136   : > { %2261 = vmatpush1.bf16.msra.mxu0 %v4110_v44  ;;  %2139 = vmatprep.subr.bf16.mxu1 %v4111_v45  ;;  %v4198_v44 = vld [vmem:[%s5072_s30 + $0x484] ss:$8 sps:$4 sm:$0xff]   ;;  %v4193_v45 = vld [vmem:[%s5072_s30 + $0x180] ss:$8 sps:$4 sm:$0xff]  }
 0x137   : > { %2262 = vmatprep.subr.bf16.mxu0 %v4113_v46  ;;  %v4196_v46 = vld [vmem:[%s5072_s30 + $0x480] ss:$8 sps:$4 sm:$0xff]  }
 0x139   : > { %2140 = vmatpush1.bf16.msra.mxu1 %v4115_v48  ;;  %v4204_v48 = vld [vmem:[%s5072_s30 + $0x494] ss:$8 sps:$4 sm:$0xff]  }
 0x13a   : > { %2263 = vmatpush1.bf16.msra.mxu0 %v4116_v50  ;;  %2141 = vmatprep.subr.bf16.mxu1 %v4117_v52  ;;  %v4202_v50 = vld [vmem:[%s5072_s30 + $0x490] ss:$8 sps:$4 sm:$0xff]   ;;  %v4210_v52 = vld [vmem:[%s5072_s30 + $0x4a4] ss:$8 sps:$4 sm:$0xff]  }
 0x13b   : > { %2264 = vmatprep.subr.bf16.mxu0 %v4119_v53  ;;  %v4205_v53 = vld [vmem:[%s5072_s30 + $0x1a0] ss:$8 sps:$4 sm:$0xff]  }
 0x13d   : > { %2142 = vmatpush1.bf16.msra.mxu1 %v4121_v55  ;;  %v4213_v55 = vld [vmem:[%s5072_s30 + $0x1b4] ss:$8 sps:$4 sm:$0xff]  }
 0x13e   : > { %2265 = vmatpush1.bf16.msra.mxu0 %v4122_v56  ;;  %2143 = vmatprep.subr.bf16.mxu1 %v4123_v57  ;;  %v4216_v56 = vld [vmem:[%s5072_s30 + $0x4b4] ss:$8 sps:$4 sm:$0xff]   ;;  %v4211_v57 = vld [vmem:[%s5072_s30 + $0x1b0] ss:$8 sps:$4 sm:$0xff]  }
 0x13f   : > { %2266 = vmatprep.subr.bf16.mxu0 %v4125_v58  ;;  %v4214_v58 = vld [vmem:[%s5072_s30 + $0x4b0] ss:$8 sps:$4 sm:$0xff]  }
 0x141   : > { %2144 = vmatpush1.bf16.msra.mxu1 %v4127_v59  ;;  %v4219_v59 = vld [vmem:[%s5072_s30 + $0x1c4] ss:$8 sps:$4 sm:$0xff]  }
 0x142   : > { %2267 = vmatpush1.bf16.msra.mxu0 %v4128_v60  ;;  %2145 = vmatprep.subr.bf16.mxu1 %v4129_v61  ;;  %v4222_v60 = vld [vmem:[%s5072_s30 + $0x4c4] ss:$8 sps:$4 sm:$0xff]   ;;  %v4217_v61 = vld [vmem:[%s5072_s30 + $0x1c0] ss:$8 sps:$4 sm:$0xff]  }
 0x143   : > { %2268 = vmatprep.subr.bf16.mxu0 %v4131_v62  ;;  %v4220_v62 = vld [vmem:[%s5072_s30 + $0x4c0] ss:$8 sps:$4 sm:$0xff]  }
 0x145   : > { %2146 = vmatpush1.bf16.msra.mxu1 %v4133_v63  ;;  %v4225_v63 = vld [vmem:[%s5072_s30 + $0x1d4] ss:$8 sps:$4 sm:$0xff]  }
 0x146   : > { %2269 = vmatpush1.bf16.msra.mxu0 %v4134_v0  ;;  %2147 = vmatprep.subr.bf16.mxu1 %v4135_v1  ;;  %v4228_v0 = vld [vmem:[%s5072_s30 + $0x4d4] ss:$8 sps:$4 sm:$0xff]   ;;  %v4223_v1 = vld [vmem:[%s5072_s30 + $0x1d0] ss:$8 sps:$4 sm:$0xff]  }
 0x147   : > { %2270 = vmatprep.subr.bf16.mxu0 %v4137_v2  ;;  %v4226_v2 = vld [vmem:[%s5072_s30 + $0x4d0] ss:$8 sps:$4 sm:$0xff]  }
 0x149   : > { %2148 = vmatpush1.bf16.msra.mxu1 %v4139_v3  ;;  %v4231_v3 = vld [vmem:[%s5072_s30 + $0x1e4] ss:$8 sps:$4 sm:$0xff]  }
 0x14a   : > { %2271 = vmatpush1.bf16.msra.mxu0 %v4140_v4  ;;  %2158 = vmatprep.subr.bf16.mxu1 %v4145_v5  ;;  %v4234_v4 = vld [vmem:[%s5072_s30 + $0x4e4] ss:$8 sps:$4 sm:$0xff]   ;;  %v4229_v5 = vld [vmem:[%s5072_s30 + $0x1e0] ss:$8 sps:$4 sm:$0xff]  }
 0x14b   : > { %2281 = vmatprep.subr.bf16.mxu0 %v4150_v6  ;;  %v4232_v6 = vld [vmem:[%s5072_s30 + $0x4e0] ss:$8 sps:$4 sm:$0xff]  }
 0x14c   : > { %2150 = vmatmul.mubr.bf16.vlgmr.msra.gmra.mrb[0].mxu1 %v3377_v7  ;;  %v4237_v7 = vld [vmem:[%s5072_s30 + $0x1f4] ss:$8 sps:$4 sm:$0xff]  }
 0x14d   : > { %2273 = vmatmul.mubr.bf16.vlgmr.msra.gmra.mrb[0].mxu0 %v3383_v8  ;;  %2159 = vmatpush1.bf16.msra.mxu1 %v4143_v9  ;;  %v4240_v8 = vld [vmem:[%s5072_s30 + $0x4f4] ss:$8 sps:$4 sm:$0xff]   ;;  %v4235_v9 = vld [vmem:[%s5072_s30 + $0x1f0] ss:$8 sps:$4 sm:$0xff]  }
 0x14e   : > { %2282 = vmatpush1.bf16.msra.mxu0 %v4148_v10  ;;  %2160 = vmatprep.subr.bf16.mxu1 %v4153_v11  ;;  %v4238_v10 = vld [vmem:[%s5072_s30 + $0x4f0] ss:$8 sps:$4 sm:$0xff]   ;;  %v4245_v11 = vld [vmem:[%s5072_s30 + $0x204] ss:$8 sps:$4 sm:$0xff]  }
 0x14f   : > { %2283 = vmatprep.subr.bf16.mxu0 %v4156_v12  ;;  %2190 = vmatprep.mubr.bf16.mxu1 %v3380_v36  ;;  %v4250_v12 = vld [vmem:[%s5072_s30 + $0x504] ss:$8 sps:$4 sm:$0xff]   ;;  %v4272_v36 = vld [vmem:[%s5072_s30 + $0x540] ss:$8 sps:$4 sm:$0xff]  }
 0x150   : > { %2313 = vmatprep.mubr.bf16.mxu0 %v3386_v39  ;;  %v4275_v39 = vld [vmem:[%s5072_s30 + $0x250] ss:$8 sps:$4 sm:$0xff]  }
 0x151   : > { %2161 = vmatpush1.bf16.msra.mxu1 %v4151_v13  ;;  %v3379_v13 = vcombine.low %v5191_v33, %v5191_v33  ;;  %v4271_v33 = vld [vmem:[%s5072_s30 + $0x244] ss:$8 sps:$4 sm:$0xff]  }
 0x152   : > { %2284 = vmatpush1.bf16.msra.mxu0 %v4154_v14  ;;  %2162 = vmatprep.subr.bf16.mxu1 %v4159_v15  ;;  %v4243_v14 = vld [vmem:[%s5072_s30 + $0x200] ss:$8 sps:$4 sm:$0xff]   ;;  %v3385_v15 = vcombine.low %v5197_v37, %v5197_v37  ;;  %v4277_v37 = vld [vmem:[%s5072_s30 + $0x254] ss:$8 sps:$4 sm:$0xff]  }
 0x153   : > { %2285 = vmatprep.subr.bf16.mxu0 %v4162_v16  ;;  %v4248_v16 = vld [vmem:[%s5072_s30 + $0x500] ss:$8 sps:$4 sm:$0xff]  }
 0x155   : > { %2163 = vmatpush1.bf16.msra.mxu1 %v4157_v17  ;;  %v4253_v17 = vld [vmem:[%s5072_s30 + $0x214] ss:$8 sps:$4 sm:$0xff]  }
 0x156   : > { %2286 = vmatpush1.bf16.msra.mxu0 %v4160_v18  ;;  %2164 = vmatprep.subr.bf16.mxu1 %v4165_v19  ;;  %v4256_v18 = vld [vmem:[%s5072_s30 + $0x514] ss:$8 sps:$4 sm:$0xff]  }
 0x157   : > { %2287 = vmatprep.subr.bf16.mxu0 %v4168_v20  ;;  %v5247_v19 = vld [vmem:[#allocation3 + $0x10] sm:$0xff]  ;;  %v5249_v20 = vld [vmem:[#allocation3 + $0x28] sm:$0xff] }
 0x159   : > { %2165 = vmatpush1.bf16.msra.mxu1 %v4163_v21  ;;  %v3382_v21 = vcombine.high %v5247_v19, %v5247_v19 }
 0x15a   : > { %2288 = vmatpush1.bf16.msra.mxu0 %v4166_v22  ;;  %2166 = vmatprep.subr.bf16.mxu1 %v4171_v23  ;;  %v3388_v22 = vcombine.high %v5249_v20, %v5249_v20  ;;  %v4251_v23 = vld [vmem:[%s5072_s30 + $0x210] ss:$8 sps:$4 sm:$0xff]  }
 0x15b   : > { %2289 = vmatprep.subr.bf16.mxu0 %v4174_v24  ;;  %v4254_v24 = vld [vmem:[%s5072_s30 + $0x510] ss:$8 sps:$4 sm:$0xff]  }
 0x15d   : > { %2167 = vmatpush1.bf16.msra.mxu1 %v4169_v25  ;;  %v4259_v25 = vld [vmem:[%s5072_s30 + $0x224] ss:$8 sps:$4 sm:$0xff]  }
 0x15e   : > { %2290 = vmatpush1.bf16.msra.mxu0 %v4172_v26  ;;  %2168 = vmatprep.subr.bf16.mxu1 %v4177_v27  ;;  %v4262_v26 = vld [vmem:[%s5072_s30 + $0x524] ss:$8 sps:$4 sm:$0xff]   ;;  %v4257_v27 = vld [vmem:[%s5072_s30 + $0x220] ss:$8 sps:$4 sm:$0xff]  }
 0x15f   : > { %2291 = vmatprep.subr.bf16.mxu0 %v4180_v28  ;;  %v4260_v28 = vld [vmem:[%s5072_s30 + $0x520] ss:$8 sps:$4 sm:$0xff]  }
 0x161   : > { %2169 = vmatpush1.bf16.msra.mxu1 %v4175_v29  ;;  %v4265_v29 = vld [vmem:[%s5072_s30 + $0x234] ss:$8 sps:$4 sm:$0xff]  }
 0x162   : > { %2292 = vmatpush1.bf16.msra.mxu0 %v4178_v30  ;;  %2170 = vmatprep.subr.bf16.mxu1 %v4183_v31  ;;  %v4268_v30 = vld [vmem:[%s5072_s30 + $0x534] ss:$8 sps:$4 sm:$0xff]   ;;  %v4263_v31 = vld [vmem:[%s5072_s30 + $0x230] ss:$8 sps:$4 sm:$0xff]  }
 0x163   : > { %2293 = vmatprep.subr.bf16.mxu0 %v4186_v32  ;;  %v4266_v32 = vld [vmem:[%s5072_s30 + $0x530] ss:$8 sps:$4 sm:$0xff]  }
 0x165   : > { %2171 = vmatpush1.bf16.msra.mxu1 %v4181_v34  ;;  %v4274_v34 = vld [vmem:[%s5072_s30 + $0x544] ss:$8 sps:$4 sm:$0xff]  }
 0x166   : > { %2294 = vmatpush1.bf16.msra.mxu0 %v4184_v35  ;;  %2172 = vmatprep.subr.bf16.mxu1 %v4189_v38  ;;  %v4269_v35 = vld [vmem:[%s5072_s30 + $0x240] ss:$8 sps:$4 sm:$0xff]   ;;  %v4280_v38 = vld [vmem:[%s5072_s30 + $0x554] ss:$8 sps:$4 sm:$0xff]  }
 0x167   : > { %2295 = vmatprep.subr.bf16.mxu0 %v4192_v40  ;;  %v4278_v40 = vld [vmem:[%s5072_s30 + $0x550] ss:$8 sps:$4 sm:$0xff]  }
 0x169   : > { %2173 = vmatpush1.bf16.msra.mxu1 %v4187_v41  ;;  %v4283_v41 = vld [vmem:[%s5072_s30 + $0x264] ss:$8 sps:$4 sm:$0xff]  }
 0x16a   : > { %2296 = vmatpush1.bf16.msra.mxu0 %v4190_v42  ;;  %2174 = vmatprep.subr.bf16.mxu1 %v4195_v43  ;;  %v4286_v42 = vld [vmem:[%s5072_s30 + $0x564] ss:$8 sps:$4 sm:$0xff]   ;;  %v4281_v43 = vld [vmem:[%s5072_s30 + $0x260] ss:$8 sps:$4 sm:$0xff]  }
 0x16b   : > { %2297 = vmatprep.subr.bf16.mxu0 %v4198_v44  ;;  %v4284_v44 = vld [vmem:[%s5072_s30 + $0x560] ss:$8 sps:$4 sm:$0xff]  }
 0x16d   : > { %2175 = vmatpush1.bf16.msra.mxu1 %v4193_v45  ;;  %v4289_v45 = vld [vmem:[%s5072_s30 + $0x274] ss:$8 sps:$4 sm:$0xff]  }
 0x16e   : > { %2298 = vmatpush1.bf16.msra.mxu0 %v4196_v46  ;;  %2176 = vmatprep.subr.bf16.mxu1 %v4201_v47  ;;  %v4292_v46 = vld [vmem:[%s5072_s30 + $0x574] ss:$8 sps:$4 sm:$0xff]   ;;  %v4287_v47 = vld [vmem:[%s5072_s30 + $0x270] ss:$8 sps:$4 sm:$0xff]  }
 0x16f   : > { %2299 = vmatprep.subr.bf16.mxu0 %v4204_v48  ;;  %v4290_v48 = vld [vmem:[%s5072_s30 + $0x570] ss:$8 sps:$4 sm:$0xff]  }
 0x171   : > { %2177 = vmatpush1.bf16.msra.mxu1 %v4199_v49  ;;  %v4295_v49 = vld [vmem:[%s5072_s30 + $0x284] ss:$8 sps:$4 sm:$0xff]  }
 0x172   : > { %2300 = vmatpush1.bf16.msra.mxu0 %v4202_v50  ;;  %2178 = vmatprep.subr.bf16.mxu1 %v4207_v51  ;;  %v4298_v50 = vld [vmem:[%s5072_s30 + $0x584] ss:$8 sps:$4 sm:$0xff]   ;;  %v4293_v51 = vld [vmem:[%s5072_s30 + $0x280] ss:$8 sps:$4 sm:$0xff]  }
 0x173   : > { %2301 = vmatprep.subr.bf16.mxu0 %v4210_v52  ;;  %v4296_v52 = vld [vmem:[%s5072_s30 + $0x580] ss:$8 sps:$4 sm:$0xff]  }
 0x175   : > { %2179 = vmatpush1.bf16.msra.mxu1 %v4205_v53  ;;  %v4301_v53 = vld [vmem:[%s5072_s30 + $0x294] ss:$8 sps:$4 sm:$0xff]  }
 0x176   : > { %2302 = vmatpush1.bf16.msra.mxu0 %v4208_v54  ;;  %2180 = vmatprep.subr.bf16.mxu1 %v4213_v55  ;;  %v4304_v54 = vld [vmem:[%s5072_s30 + $0x594] ss:$8 sps:$4 sm:$0xff]   ;;  %v4299_v55 = vld [vmem:[%s5072_s30 + $0x290] ss:$8 sps:$4 sm:$0xff]  }
 0x177   : > { %2303 = vmatprep.subr.bf16.mxu0 %v4216_v56  ;;  %v4302_v56 = vld [vmem:[%s5072_s30 + $0x590] ss:$8 sps:$4 sm:$0xff]  }
 0x179   : > { %2181 = vmatpush1.bf16.msra.mxu1 %v4211_v57  ;;  %v4307_v57 = vld [vmem:[%s5072_s30 + $0x2a4] ss:$8 sps:$4 sm:$0xff]  }
 0x17a   : > { %2304 = vmatpush1.bf16.msra.mxu0 %v4214_v58  ;;  %2182 = vmatprep.subr.bf16.mxu1 %v4219_v59  ;;  %v4310_v58 = vld [vmem:[%s5072_s30 + $0x5a4] ss:$8 sps:$4 sm:$0xff]   ;;  %v4305_v59 = vld [vmem:[%s5072_s30 + $0x2a0] ss:$8 sps:$4 sm:$0xff]  }
 0x17b   : > { %2305 = vmatprep.subr.bf16.mxu0 %v4222_v60  ;;  %v4308_v60 = vld [vmem:[%s5072_s30 + $0x5a0] ss:$8 sps:$4 sm:$0xff]  }
 0x17d   : > { %2183 = vmatpush1.bf16.msra.mxu1 %v4217_v61  ;;  %v4313_v61 = vld [vmem:[%s5072_s30 + $0x2b4] ss:$8 sps:$4 sm:$0xff]  }
 0x17e   : > { %2306 = vmatpush1.bf16.msra.mxu0 %v4220_v62  ;;  %2184 = vmatprep.subr.bf16.mxu1 %v4225_v63  ;;  %v4316_v62 = vld [vmem:[%s5072_s30 + $0x5b4] ss:$8 sps:$4 sm:$0xff]   ;;  %v4311_v63 = vld [vmem:[%s5072_s30 + $0x2b0] ss:$8 sps:$4 sm:$0xff]  }
 0x17f   : > { %2307 = vmatprep.subr.bf16.mxu0 %v4228_v0  ;;  %v4314_v0 = vld [vmem:[%s5072_s30 + $0x5b0] ss:$8 sps:$4 sm:$0xff]  }
 0x181   : > { %2185 = vmatpush1.bf16.msra.mxu1 %v4223_v1  ;;  %v4319_v1 = vld [vmem:[%s5072_s30 + $0x2c4] ss:$8 sps:$4 sm:$0xff]  }
 0x182   : > { %2308 = vmatpush1.bf16.msra.mxu0 %v4226_v2  ;;  %2186 = vmatprep.subr.bf16.mxu1 %v4231_v3  ;;  %v4322_v2 = vld [vmem:[%s5072_s30 + $0x5c4] ss:$8 sps:$4 sm:$0xff]   ;;  %v4317_v3 = vld [vmem:[%s5072_s30 + $0x2c0] ss:$8 sps:$4 sm:$0xff]  }
 0x183   : > { %2309 = vmatprep.subr.bf16.mxu0 %v4234_v4  ;;  %v4320_v4 = vld [vmem:[%s5072_s30 + $0x5c0] ss:$8 sps:$4 sm:$0xff]  }
 0x185   : > { %2187 = vmatpush1.bf16.msra.mxu1 %v4229_v5  ;;  %v4325_v5 = vld [vmem:[%s5072_s30 + $0x2d4] ss:$8 sps:$4 sm:$0xff]  }
 0x186   : > { %2310 = vmatpush1.bf16.msra.mxu0 %v4232_v6  ;;  %2188 = vmatprep.subr.bf16.mxu1 %v4237_v7  ;;  %v4328_v6 = vld [vmem:[%s5072_s30 + $0x5d4] ss:$8 sps:$4 sm:$0xff]   ;;  %v4323_v7 = vld [vmem:[%s5072_s30 + $0x2d0] ss:$8 sps:$4 sm:$0xff]  }
 0x187   : > { %2311 = vmatprep.subr.bf16.mxu0 %v4240_v8  ;;  %v4326_v8 = vld [vmem:[%s5072_s30 + $0x5d0] ss:$8 sps:$4 sm:$0xff]  }
 0x189   : > { %2189 = vmatpush1.bf16.msra.mxu1 %v4235_v9  ;;  %v4331_v9 = vld [vmem:[%s5072_s30 + $0x2e4] ss:$8 sps:$4 sm:$0xff]  }
 0x18a   : > { %2312 = vmatpush1.bf16.msra.mxu0 %v4238_v10  ;;  %2199 = vmatprep.subr.bf16.mxu1 %v4245_v11  ;;  %v4334_v10 = vld [vmem:[%s5072_s30 + $0x5e4] ss:$8 sps:$4 sm:$0xff]   ;;  %v4329_v11 = vld [vmem:[%s5072_s30 + $0x2e0] ss:$8 sps:$4 sm:$0xff]  }
 0x18b   : > { %2322 = vmatprep.subr.bf16.mxu0 %v4250_v12  ;;  %v4332_v12 = vld [vmem:[%s5072_s30 + $0x5e0] ss:$8 sps:$4 sm:$0xff]  }
 0x18c   : > { %2191 = vmatmul.mubr.bf16.vlgmr.msra.gmra.mrb[0].mxu1 %v3379_v13  ;;  %v4337_v13 = vld [vmem:[%s5072_s30 + $0x2f4] ss:$8 sps:$4 sm:$0xff]  }
 0x18d   : > { %2314 = vmatmul.mubr.bf16.vlgmr.msra.gmra.mrb[0].mxu0 %v3385_v15  ;;  %2200 = vmatpush1.bf16.msra.mxu1 %v4243_v14  ;;  %v4340_v14 = vld [vmem:[%s5072_s30 + $0x5f4] ss:$8 sps:$4 sm:$0xff]   ;;  %v4335_v15 = vld [vmem:[%s5072_s30 + $0x2f0] ss:$8 sps:$4 sm:$0xff]  }
 0x18e   : > { %2323 = vmatpush1.bf16.msra.mxu0 %v4248_v16  ;;  %2201 = vmatprep.subr.bf16.mxu1 %v4253_v17  ;;  %v4338_v16 = vld [vmem:[%s5072_s30 + $0x5f0] ss:$8 sps:$4 sm:$0xff]   ;;  %v4347_v17 = vld [vmem:[%s5072_s30 + $0x604] ss:$8 sps:$4 sm:$0xff]  }
 0x18f   : > { %2324 = vmatprep.subr.bf16.mxu0 %v4256_v18  ;;  %2231 = vmatprep.mubr.bf16.mxu1 %v3382_v21  ;;  %v4356_v18 = vld [vmem:[%s5072_s30 + $0x704] ss:$8 sps:$4 sm:$0xff]   ;;  %v3381_v21 = vcombine.low %v5247_v19, %v5247_v19 }
 0x190   : > { %2354 = vmatprep.mubr.bf16.mxu0 %v3388_v22  ;;  %v3387_v22 = vcombine.low %v5249_v20, %v5249_v20 }
 0x191   : > { %2202 = vmatpush1.bf16.msra.mxu1 %v4251_v23  ;;  %v5319_v23 = vld [vmem:[#allocation3 + $0x38] sm:$0xff] }
 0x192   : > { %2325 = vmatpush1.bf16.msra.mxu0 %v4254_v24  ;;  %2203 = vmatprep.subr.bf16.mxu1 %v4259_v25  ;;  %v5321_v24 = vld [vmem:[#allocation3 + $0x30] sm:$0xff]  ;;  %v3392_v19 = vcombine.high %v5319_v23, %v5319_v23 }
 0x193   : > { %2326 = vmatprep.subr.bf16.mxu0 %v4262_v26  ;;  %v4345_v25 = vld [vmem:[%s5072_s30 + $0x600] ss:$8 sps:$4 sm:$0xff]   ;;  %v3390_v20 = vcombine.high %v5321_v24, %v5321_v24 }
 0x194   : > { %v4354_v26 = vld [vmem:[%s5072_s30 + $0x700] ss:$8 sps:$4 sm:$0xff]  }
 0x195   : > { %2204 = vmatpush1.bf16.msra.mxu1 %v4257_v27  ;;  %v4350_v27 = vld [vmem:[%s5072_s30 + $0x614] ss:$8 sps:$4 sm:$0xff]  }
 0x196   : > { %2327 = vmatpush1.bf16.msra.mxu0 %v4260_v28  ;;  %2205 = vmatprep.subr.bf16.mxu1 %v4265_v29  ;;  %v4362_v28 = vld [vmem:[%s5072_s30 + $0x714] ss:$8 sps:$4 sm:$0xff]   ;;  %v4348_v29 = vld [vmem:[%s5072_s30 + $0x610] ss:$8 sps:$4 sm:$0xff]  }
 0x197   : > { %2328 = vmatprep.subr.bf16.mxu0 %v4268_v30  ;;  %v4360_v30 = vld [vmem:[%s5072_s30 + $0x710] ss:$8 sps:$4 sm:$0xff]  }
 0x199   : > { %2206 = vmatpush1.bf16.msra.mxu1 %v4263_v31  ;;  %v4353_v31 = vld [vmem:[%s5072_s30 + $0x624] ss:$8 sps:$4 sm:$0xff]  }
 0x19a   : > { %2329 = vmatpush1.bf16.msra.mxu0 %v4266_v32  ;;  %2207 = vmatprep.subr.bf16.mxu1 %v4271_v33  ;;  %v4368_v32 = vld [vmem:[%s5072_s30 + $0x724] ss:$8 sps:$4 sm:$0xff]   ;;  %v4351_v33 = vld [vmem:[%s5072_s30 + $0x620] ss:$8 sps:$4 sm:$0xff]  }
 0x19b   : > { %2330 = vmatprep.subr.bf16.mxu0 %v4274_v34  ;;  %v4366_v34 = vld [vmem:[%s5072_s30 + $0x720] ss:$8 sps:$4 sm:$0xff]  }
 0x19d   : > { %2208 = vmatpush1.bf16.msra.mxu1 %v4269_v35  ;;  %v4359_v35 = vld [vmem:[%s5072_s30 + $0x634] ss:$8 sps:$4 sm:$0xff]  }
 0x19e   : > { %2331 = vmatpush1.bf16.msra.mxu0 %v4272_v36  ;;  %2209 = vmatprep.subr.bf16.mxu1 %v4277_v37  ;;  %v4374_v36 = vld [vmem:[%s5072_s30 + $0x734] ss:$8 sps:$4 sm:$0xff]   ;;  %v4357_v37 = vld [vmem:[%s5072_s30 + $0x630] ss:$8 sps:$4 sm:$0xff]  }
 0x19f   : > { %2332 = vmatprep.subr.bf16.mxu0 %v4280_v38  ;;  %v4372_v38 = vld [vmem:[%s5072_s30 + $0x730] ss:$8 sps:$4 sm:$0xff]  }
 0x1a1   : > { %2210 = vmatpush1.bf16.msra.mxu1 %v4275_v39  ;;  %v4365_v39 = vld [vmem:[%s5072_s30 + $0x644] ss:$8 sps:$4 sm:$0xff]  }
 0x1a2   : > { %2333 = vmatpush1.bf16.msra.mxu0 %v4278_v40  ;;  %2211 = vmatprep.subr.bf16.mxu1 %v4283_v41  ;;  %v4380_v40 = vld [vmem:[%s5072_s30 + $0x744] ss:$8 sps:$4 sm:$0xff]   ;;  %v4363_v41 = vld [vmem:[%s5072_s30 + $0x640] ss:$8 sps:$4 sm:$0xff]  }
 0x1a3   : > { %2334 = vmatprep.subr.bf16.mxu0 %v4286_v42  ;;  %v4378_v42 = vld [vmem:[%s5072_s30 + $0x740] ss:$8 sps:$4 sm:$0xff]  }
 0x1a5   : > { %2212 = vmatpush1.bf16.msra.mxu1 %v4281_v43  ;;  %v4371_v43 = vld [vmem:[%s5072_s30 + $0x654] ss:$8 sps:$4 sm:$0xff]  }
 0x1a6   : > { %2335 = vmatpush1.bf16.msra.mxu0 %v4284_v44  ;;  %2213 = vmatprep.subr.bf16.mxu1 %v4289_v45  ;;  %v4386_v44 = vld [vmem:[%s5072_s30 + $0x754] ss:$8 sps:$4 sm:$0xff]   ;;  %v4369_v45 = vld [vmem:[%s5072_s30 + $0x650] ss:$8 sps:$4 sm:$0xff]  }
 0x1a7   : > { %2336 = vmatprep.subr.bf16.mxu0 %v4292_v46  ;;  %v4384_v46 = vld [vmem:[%s5072_s30 + $0x750] ss:$8 sps:$4 sm:$0xff]  }
 0x1a9   : > { %2214 = vmatpush1.bf16.msra.mxu1 %v4287_v47  ;;  %v4377_v47 = vld [vmem:[%s5072_s30 + $0x664] ss:$8 sps:$4 sm:$0xff]  }
 0x1aa   : > { %2337 = vmatpush1.bf16.msra.mxu0 %v4290_v48  ;;  %2215 = vmatprep.subr.bf16.mxu1 %v4295_v49  ;;  %v4392_v48 = vld [vmem:[%s5072_s30 + $0x764] ss:$8 sps:$4 sm:$0xff]   ;;  %v4375_v49 = vld [vmem:[%s5072_s30 + $0x660] ss:$8 sps:$4 sm:$0xff]  }
 0x1ab   : > { %2338 = vmatprep.subr.bf16.mxu0 %v4298_v50  ;;  %v4390_v50 = vld [vmem:[%s5072_s30 + $0x760] ss:$8 sps:$4 sm:$0xff]  }
 0x1ad   : > { %2216 = vmatpush1.bf16.msra.mxu1 %v4293_v51  ;;  %v4383_v51 = vld [vmem:[%s5072_s30 + $0x674] ss:$8 sps:$4 sm:$0xff]  }
 0x1ae   : > { %2339 = vmatpush1.bf16.msra.mxu0 %v4296_v52  ;;  %2217 = vmatprep.subr.bf16.mxu1 %v4301_v53  ;;  %v4398_v52 = vld [vmem:[%s5072_s30 + $0x774] ss:$8 sps:$4 sm:$0xff]   ;;  %v4381_v53 = vld [vmem:[%s5072_s30 + $0x670] ss:$8 sps:$4 sm:$0xff]  }
 0x1af   : > { %2340 = vmatprep.subr.bf16.mxu0 %v4304_v54  ;;  %v4396_v54 = vld [vmem:[%s5072_s30 + $0x770] ss:$8 sps:$4 sm:$0xff]  }
 0x1b1   : > { %2218 = vmatpush1.bf16.msra.mxu1 %v4299_v55  ;;  %v4389_v55 = vld [vmem:[%s5072_s30 + $0x684] ss:$8 sps:$4 sm:$0xff]  }
 0x1b2   : > { %2341 = vmatpush1.bf16.msra.mxu0 %v4302_v56  ;;  %2219 = vmatprep.subr.bf16.mxu1 %v4307_v57  ;;  %v4404_v56 = vld [vmem:[%s5072_s30 + $0x784] ss:$8 sps:$4 sm:$0xff]   ;;  %v4387_v57 = vld [vmem:[%s5072_s30 + $0x680] ss:$8 sps:$4 sm:$0xff]  }
 0x1b3   : > { %2342 = vmatprep.subr.bf16.mxu0 %v4310_v58  ;;  %v4402_v58 = vld [vmem:[%s5072_s30 + $0x780] ss:$8 sps:$4 sm:$0xff]  }
 0x1b5   : > { %2220 = vmatpush1.bf16.msra.mxu1 %v4305_v59  ;;  %v4395_v59 = vld [vmem:[%s5072_s30 + $0x694] ss:$8 sps:$4 sm:$0xff]  }
 0x1b6   : > { %2343 = vmatpush1.bf16.msra.mxu0 %v4308_v60  ;;  %2221 = vmatprep.subr.bf16.mxu1 %v4313_v61  ;;  %v4410_v60 = vld [vmem:[%s5072_s30 + $0x794] ss:$8 sps:$4 sm:$0xff]   ;;  %v4393_v61 = vld [vmem:[%s5072_s30 + $0x690] ss:$8 sps:$4 sm:$0xff]  }
 0x1b7   : > { %2344 = vmatprep.subr.bf16.mxu0 %v4316_v62  ;;  %v4408_v62 = vld [vmem:[%s5072_s30 + $0x790] ss:$8 sps:$4 sm:$0xff]  }
 0x1b9   : > { %2222 = vmatpush1.bf16.msra.mxu1 %v4311_v63  ;;  %v4401_v63 = vld [vmem:[%s5072_s30 + $0x6a4] ss:$8 sps:$4 sm:$0xff]  }
 0x1ba   : > { %2345 = vmatpush1.bf16.msra.mxu0 %v4314_v0  ;;  %2223 = vmatprep.subr.bf16.mxu1 %v4319_v1  ;;  %v4416_v0 = vld [vmem:[%s5072_s30 + $0x7a4] ss:$8 sps:$4 sm:$0xff]   ;;  %v4399_v1 = vld [vmem:[%s5072_s30 + $0x6a0] ss:$8 sps:$4 sm:$0xff]  }
 0x1bb   : > { %2346 = vmatprep.subr.bf16.mxu0 %v4322_v2  ;;  %v4414_v2 = vld [vmem:[%s5072_s30 + $0x7a0] ss:$8 sps:$4 sm:$0xff]  }
 0x1bd   : > { %2224 = vmatpush1.bf16.msra.mxu1 %v4317_v3  ;;  %v4407_v3 = vld [vmem:[%s5072_s30 + $0x6b4] ss:$8 sps:$4 sm:$0xff]  }
 0x1be   : > { %2347 = vmatpush1.bf16.msra.mxu0 %v4320_v4  ;;  %2225 = vmatprep.subr.bf16.mxu1 %v4325_v5  ;;  %v4422_v4 = vld [vmem:[%s5072_s30 + $0x7b4] ss:$8 sps:$4 sm:$0xff]   ;;  %v4405_v5 = vld [vmem:[%s5072_s30 + $0x6b0] ss:$8 sps:$4 sm:$0xff]  }
 0x1bf   : > { %2348 = vmatprep.subr.bf16.mxu0 %v4328_v6  ;;  %v4420_v6 = vld [vmem:[%s5072_s30 + $0x7b0] ss:$8 sps:$4 sm:$0xff]  }
 0x1c1   : > { %2226 = vmatpush1.bf16.msra.mxu1 %v4323_v7  ;;  %v4413_v7 = vld [vmem:[%s5072_s30 + $0x6c4] ss:$8 sps:$4 sm:$0xff]  }
 0x1c2   : > { %2349 = vmatpush1.bf16.msra.mxu0 %v4326_v8  ;;  %2227 = vmatprep.subr.bf16.mxu1 %v4331_v9  ;;  %v4428_v8 = vld [vmem:[%s5072_s30 + $0x7c4] ss:$8 sps:$4 sm:$0xff]   ;;  %v4411_v9 = vld [vmem:[%s5072_s30 + $0x6c0] ss:$8 sps:$4 sm:$0xff]  }
 0x1c3   : > { %2350 = vmatprep.subr.bf16.mxu0 %v4334_v10  ;;  %v4426_v10 = vld [vmem:[%s5072_s30 + $0x7c0] ss:$8 sps:$4 sm:$0xff]  }
 0x1c5   : > { %2228 = vmatpush1.bf16.msra.mxu1 %v4329_v11  ;;  %v4419_v11 = vld [vmem:[%s5072_s30 + $0x6d4] ss:$8 sps:$4 sm:$0xff]  }
 0x1c6   : > { %2351 = vmatpush1.bf16.msra.mxu0 %v4332_v12  ;;  %2229 = vmatprep.subr.bf16.mxu1 %v4337_v13  ;;  %v3391_v12 = vcombine.low %v5319_v23, %v5319_v23  ;;  %v4417_v13 = vld [vmem:[%s5072_s30 + $0x6d0] ss:$8 sps:$4 sm:$0xff]  }
 0x1c7   : > { %2352 = vmatprep.subr.bf16.mxu0 %v4340_v14  ;;  %v4425_v14 = vld [vmem:[%s5072_s30 + $0x6e4] ss:$8 sps:$4 sm:$0xff]  }
 0x1c9   : > { %2230 = vmatpush1.bf16.msra.mxu1 %v4335_v15  ;;  %v4423_v15 = vld [vmem:[%s5072_s30 + $0x6e0] ss:$8 sps:$4 sm:$0xff]  }
 0x1ca   : > { %2353 = vmatpush1.bf16.msra.mxu0 %v4338_v16  ;;  %2404 = vmatprep.subr.bf16.mxu1 %v4356_v18  ;;  %v4431_v16 = vld [vmem:[%s5072_s30 + $0x6f4] ss:$8 sps:$4 sm:$0xff]   ;;  %v3389_v18 = vcombine.low %v5321_v24, %v5321_v24 }
 0x1cb   : > { %2363 = vmatprep.subr.bf16.mxu0 %v4347_v17  ;;  %v4429_v17 = vld [vmem:[%s5072_s30 + $0x6f0] ss:$8 sps:$4 sm:$0xff]  }
 0x1cc   : > { %2232 = vmatmul.mubr.bf16.vlgmr.msra.gmra.mrb[0].mxu1 %v3381_v21  ;;  %v2476_v21 = vld [vmem:[%s5097_s14 + $0x80] sm:$0xff]  ;;  %v2462_v24 = vld [vmem:[%s5097_s14 + $0x10] sm:$0xff] }
 0x1cd   : > { %2355 = vmatmul.mubr.bf16.vlgmr.msra.gmra.mrb[0].mxu0 %v3387_v22  ;;  %2405 = vmatpush1.bf16.msra.mxu1 %v4354_v26  ;;  %v2477_v22 = vld [vmem:[%s5097_s14 + $0x88] sm:$0xff] }
 0x1ce   : > { %2364 = vmatpush1.bf16.msra.mxu0 %v4345_v25  ;;  %2406 = vmatprep.subr.bf16.mxu1 %v4362_v28  ;;  %v3707_v23 = vpack.c.bf16 %v2477_v22, %v2476_v21  ;;  %v2460_v25 = vld [vmem:[%s5097_s14] sm:$0xff]  ;;  %v2461_v26 = vld [vmem:[%s5097_s14 + $0x8] sm:$0xff]  ;;  %v2478_v28 = vld [vmem:[%s5097_s14 + $0x90] sm:$0xff] }
 0x1cf   : > { %2365 = vmatprep.subr.bf16.mxu0 %v4350_v27  ;;  %3643 = vmatprep.mubr.msk.bf16.mxu1 %vm2113_vm1, %v3392_v19  ;;  %v3709_v27 = vpack.c.bf16 %v2461_v26, %v2460_v25  ;;  %v2479_v19 = vld [vmem:[%s5097_s14 + $0x98] sm:$0xff] }
 0x1d0   : > { %2395 = vmatprep.mubr.bf16.mxu0 %v3390_v20  ;;  %v3711_v20 = vpack.c.bf16 %v2479_v19, %v2478_v28 }
 0x1d1   : > { %2407 = vmatpush1.bf16.msra.mxu1 %v4360_v30 }
 0x1d2   : > { %2366 = vmatpush1.bf16.msra.mxu0 %v4348_v29  ;;  %2408 = vmatprep.subr.bf16.mxu1 %v4368_v32  ;;  %v2463_v29 = vld [vmem:[%s5097_s14 + $0x18] sm:$0xff]  ;;  %v2481_v32 = vld [vmem:[%s5097_s14 + $0xa8] sm:$0xff] }
 0x1d3   : > { %2367 = vmatprep.subr.bf16.mxu0 %v4353_v31  ;;  %v3713_v30 = vpack.c.bf16 %v2463_v29, %v2462_v24  ;;  %v2480_v31 = vld [vmem:[%s5097_s14 + $0xa0] sm:$0xff] }
 0x1d5   : > { %2409 = vmatpush1.bf16.msra.mxu1 %v4366_v34  ;;  %v2464_v34 = vld [vmem:[%s5097_s14 + $0x20] sm:$0xff] }
 0x1d6   : > { %2368 = vmatpush1.bf16.msra.mxu0 %v4351_v33  ;;  %2410 = vmatprep.subr.bf16.mxu1 %v4374_v36  ;;  %v3715_v33 = vpack.c.bf16 %v2481_v32, %v2480_v31 }
 0x1d7   : > { %2369 = vmatprep.subr.bf16.mxu0 %v4359_v35  ;;  %v2465_v35 = vld [vmem:[%s5097_s14 + $0x28] sm:$0xff] }
 0x1d8   : > { %v3717_v36 = vpack.c.bf16 %v2465_v35, %v2464_v34 }
 0x1d9   : > { %2411 = vmatpush1.bf16.msra.mxu1 %v4372_v38  ;;  %v2483_v38 = vld [vmem:[%s5097_s14 + $0xb8] sm:$0xff] }
 0x1da   : > { %2370 = vmatpush1.bf16.msra.mxu0 %v4357_v37  ;;  %2412 = vmatprep.subr.bf16.mxu1 %v4380_v40  ;;  %v2482_v37 = vld [vmem:[%s5097_s14 + $0xb0] sm:$0xff] }
 0x1db   : > { %2371 = vmatprep.subr.bf16.mxu0 %v4365_v39  ;;  %v3719_v39 = vpack.c.bf16 %v2483_v38, %v2482_v37  ;;  %v2466_v40 = vld [vmem:[%s5097_s14 + $0x30] sm:$0xff] }
 0x1dd   : > { %2413 = vmatpush1.bf16.msra.mxu1 %v4378_v42 }
 0x1de   : > { %2372 = vmatpush1.bf16.msra.mxu0 %v4363_v41  ;;  %2414 = vmatprep.subr.bf16.mxu1 %v4386_v44  ;;  %v2467_v41 = vld [vmem:[%s5097_s14 + $0x38] sm:$0xff]  ;;  %v2485_v44 = vld [vmem:[%s5097_s14 + $0xc8] sm:$0xff] }
 0x1df   : > { %2373 = vmatprep.subr.bf16.mxu0 %v4371_v43  ;;  %v3721_v42 = vpack.c.bf16 %v2467_v41, %v2466_v40  ;;  %v2484_v43 = vld [vmem:[%s5097_s14 + $0xc0] sm:$0xff] }
 0x1e0   : > { %v2459_v41 = vld [vmem:[#allocation2] sm:$0xff] }
 0x1e1   : > { %2415 = vmatpush1.bf16.msra.mxu1 %v4384_v46  ;;  %v2468_v46 = vld [vmem:[%s5097_s14 + $0x40] sm:$0xff] }
 0x1e2   : > { %2374 = vmatpush1.bf16.msra.mxu0 %v4369_v45  ;;  %2416 = vmatprep.subr.bf16.mxu1 %v4392_v48  ;;  %v3723_v45 = vpack.c.bf16 %v2485_v44, %v2484_v43 }
 0x1e3   : > { %2375 = vmatprep.subr.bf16.mxu0 %v4377_v47  ;;  %v2469_v47 = vld [vmem:[%s5097_s14 + $0x48] sm:$0xff] }
 0x1e4   : > { %v3725_v48 = vpack.c.bf16 %v2469_v47, %v2468_v46  ;;  %v2597_v46 = vld [vmem:[#allocation13 + $0x18] sm:$0x3] (!%p3644_p6)  ;;  %v2594_v47 = vld [vmem:[#allocation13] sm:$0xff] (!%p3644_p6) }
 0x1e5   : > { %2417 = vmatpush1.bf16.msra.mxu1 %v4390_v50  ;;  %v2487_v50 = vld [vmem:[%s5097_s14 + $0xd8] sm:$0xff] }
 0x1e6   : > { %2376 = vmatpush1.bf16.msra.mxu0 %v4375_v49  ;;  %2418 = vmatprep.subr.bf16.mxu1 %v4398_v52  ;;  %v2486_v49 = vld [vmem:[%s5097_s14 + $0xd0] sm:$0xff] }
 0x1e7   : > { %2377 = vmatprep.subr.bf16.mxu0 %v4383_v51  ;;  %v3727_v51 = vpack.c.bf16 %v2487_v50, %v2486_v49  ;;  %v2470_v52 = vld [vmem:[%s5097_s14 + $0x50] sm:$0xff]  ;;  %v2596_v50 = vld [vmem:[#allocation13 + $0x10] sm:$0x3] (!%p3644_p6) }
 0x1e9   : > { %2419 = vmatpush1.bf16.msra.mxu1 %v4396_v54 }
 0x1ea   : > { %2378 = vmatpush1.bf16.msra.mxu0 %v4381_v53  ;;  %2420 = vmatprep.subr.bf16.mxu1 %v4404_v56  ;;  %v2471_v53 = vld [vmem:[%s5097_s14 + $0x58] sm:$0xff]  ;;  %v2489_v56 = vld [vmem:[%s5097_s14 + $0xe8] sm:$0xff] }
 0x1eb   : > { %2379 = vmatprep.subr.bf16.mxu0 %v4389_v55  ;;  %v3729_v54 = vpack.c.bf16 %v2471_v53, %v2470_v52  ;;  %v2488_v55 = vld [vmem:[%s5097_s14 + $0xe0] sm:$0xff]  ;;  %v3742_v52 = vpack.c.bf16 (!%p3644_p6), %v2596_v50, %v2594_v47  ;;  %v4747_v53 = vmov (!%p3644_p6), 0.0  }
 0x1ed   : > { %2421 = vmatpush1.bf16.msra.mxu1 %v4402_v58  ;;  %v2472_v58 = vld [vmem:[%s5097_s14 + $0x60] sm:$0xff] }
 0x1ee   : > { %2380 = vmatpush1.bf16.msra.mxu0 %v4387_v57  ;;  %2422 = vmatprep.subr.bf16.mxu1 %v4410_v60  ;;  %v3731_v57 = vpack.c.bf16 %v2489_v56, %v2488_v55  ;;  %v2734_v55 = vld [vmem:[#allocation14 + $0x8] sm:$0xff] (!%p3644_p6)  ;;  %v2736_v56 = vld [vmem:[#allocation14 + $0x18] sm:$0xff] (!%p3644_p6) }
 0x1ef   : > { %2381 = vmatprep.subr.bf16.mxu0 %v4395_v59  ;;  %v2473_v59 = vld [vmem:[%s5097_s14 + $0x68] sm:$0xff] }
 0x1f0   : > { %v3733_v60 = vpack.c.bf16 %v2473_v59, %v2472_v58  ;;  %v5438_v58 = vpack.c.bf16 (!%p3644_p6), %v2736_v56, %v2734_v55  ;;  %v2733_v59 = vld [vmem:[#allocation14] sm:$0xff] (!%p3644_p6)  ;;  %v2770_v56 = vld [vmem:[#allocation14 + $0x128] sm:$0xff] (!%p3644_p6) }
 0x1f1   : > { %2423 = vmatpush1.bf16.msra.mxu1 %v4408_v62  ;;  %v2491_v62 = vld [vmem:[%s5097_s14 + $0xf8] sm:$0xff] }
 0x1f2   : > { %2382 = vmatpush1.bf16.msra.mxu0 %v4393_v61  ;;  %2424 = vmatprep.subr.bf16.mxu1 %v4416_v0  ;;  %v2490_v61 = vld [vmem:[%s5097_s14 + $0xf0] sm:$0xff] }
 0x1f3   : > { %2383 = vmatprep.subr.bf16.mxu0 %v4401_v63  ;;  %v3735_v63 = vpack.c.bf16 %v2491_v62, %v2490_v61  ;;  %v2474_v0 = vld [vmem:[%s5097_s14 + $0x70] sm:$0xff]  ;;  %v2738_v61 = vld [vmem:[#allocation14 + $0x28] sm:$0xff] (!%p3644_p6) }
 0x1f5   : > { %2425 = vmatpush1.bf16.msra.mxu1 %v4414_v2 }
 0x1f6   : > { %2384 = vmatpush1.bf16.msra.mxu0 %v4399_v1  ;;  %2426 = vmatprep.subr.bf16.mxu1 %v4422_v4  ;;  %v2475_v1 = vld [vmem:[%s5097_s14 + $0x78] sm:$0xff] }
 0x1f7   : > { %2385 = vmatprep.subr.bf16.mxu0 %v4407_v3  ;;  %v3737_v2 = vpack.c.bf16 %v2475_v1, %v2474_v0 }
 0x1f9   : > { %2427 = vmatpush1.bf16.msra.mxu1 %v4420_v6 }
 0x1fa   : > { %2386 = vmatpush1.bf16.msra.mxu0 %v4405_v5  ;;  %2428 = vmatprep.subr.bf16.mxu1 %v4428_v8 }
 0x1fb   : > { %2387 = vmatprep.subr.bf16.mxu0 %v4413_v7  ;;  %v798_v7 = vlaneseq }
 0x1fd   : > { %2429 = vmatpush1.bf16.msra.mxu1 %v4426_v10  ;;  %v799_v8 = vshrl.u32 %v798_v7, 7 }
 0x1fe   : > { %2388 = vmatpush1.bf16.msra.mxu0 %v4411_v9  ;;  %3708 = vmatprep.subr.bf16.mxu1 %v3707_v23 }
 0x1ff   : > { %2389 = vmatprep.subr.bf16.mxu0 %v4419_v11 }
 0x200   : > { %2437 = vmatmul.mubr.bf16.vlgmr.msra.gmra.mrb[4].mxu1 %v3391_v12  ;;  %v5419_v12 = vsub.s32 0, %v799_v8 }
 0x201   : > { %3710 = vmatpush3.bf16.msra.mxu1 %v3709_v27 }
 0x202   : > { %2390 = vmatpush1.bf16.msra.mxu0 %v4417_v13  ;;  %3712 = vmatprep.subr.bf16.mxu1 %v3711_v20 }
 0x203   : > { %2391 = vmatprep.subr.bf16.mxu0 %v4425_v14  ;;  %v796_v14 = vld [vmem:[%s459_s26] sm:$0x3] }
 0x205   : > { %3714 = vmatpush3.bf16.msra.mxu1 %v3713_v30 }
 0x206   : > { %2392 = vmatpush1.bf16.msra.mxu0 %v4423_v15  ;;  %3716 = vmatprep.subr.bf16.mxu1 %v3715_v33  ;;  %v5423_v15 = vsub.s32 1, %v799_v8 }
 0x207   : > { %2393 = vmatprep.subr.bf16.mxu0 %v4431_v16  ;;  %v801_v16 = vrot.slane %v796_v14, %v5419_v12 }
 0x209   : > { %3718 = vmatpush3.bf16.msra.mxu1 %v3717_v36 }
 0x20a   : > { %2394 = vmatpush1.bf16.msra.mxu0 %v4429_v17  ;;  %3720 = vmatprep.subr.bf16.mxu1 %v3719_v39  ;;  %v805_v17 = vrot.slane %v796_v14, %v5423_v15 }
 0x20b   : > { %3786 = vmatprep.subr.bf16.mxu0 (!%p3644_p6), %v5438_v58 }
 0x20d   : > { %2396 = vmatmul.mubr.bf16.vlgmr.msra.gmra.mrb[0].mxu0 %v3389_v18  ;;  %3722 = vmatpush3.bf16.msra.mxu1 %v3721_v42 }
 0x20e   : > { %3724 = vmatprep.subr.bf16.mxu1 %v3723_v45  ;;  %v2595_v45 = vld [vmem:[#allocation13 + $0x8] sm:$0xff] (!%p3644_p6) }
 0x211   : > { %3726 = vmatpush3.bf16.msra.mxu1 %v3725_v48  ;;  %v3739_v48 = vpack.c.bf16 (!%p3644_p6), %v2597_v46, %v2595_v45  ;;  %v2766_v45 = vld [vmem:[#allocation14 + $0x108] sm:$0xff] (!%p3644_p6)  ;;  %v2768_v46 = vld [vmem:[#allocation14 + $0x118] sm:$0xff] (!%p3644_p6) }
 0x212   : > { %3728 = vmatprep.subr.bf16.mxu1 %v3727_v51 }
 0x215   : > { %3730 = vmatpush3.bf16.msra.mxu1 %v3729_v54  ;;  %v3645_v54 = vld [vmem:[#allocation8] ss:$0 sm:$0xff] (!%p3644_p6) }
 0x216   : > { %3732 = vmatprep.subr.bf16.mxu1 %v3731_v57 }
 0x219   : > { %3734 = vmatpush3.bf16.msra.mxu1 %v3733_v60  ;;  %v2735_v60 = vld [vmem:[#allocation14 + $0x10] sm:$0xff] (!%p3644_p6) }
 0x21a   : > { %3736 = vmatprep.subr.bf16.mxu1 %v3735_v63  ;;  %v5442_v62 = vpack.c.bf16 (!%p3644_p6), %v2735_v60, %v2733_v59  ;;  %v2740_v63 = vld [vmem:[#allocation14 + $0x38] sm:$0xff] (!%p3644_p6)  ;;  %v2769_v60 = vld [vmem:[#allocation14 + $0x120] sm:$0xff] (!%p3644_p6) }
 0x21b   : > { %v5446_v1 = vpack.c.bf16 (!%p3644_p6), %v2740_v63, %v2738_v61  ;;  %v2771_v61 = vld [vmem:[#allocation14 + $0x130] sm:$0xff] (!%p3644_p6) }
 0x21c   : > { %3788 = vmatpush1.bf16.msra.mxu0 (!%p3644_p6), %v5442_v62  ;;  %v5520_v63 = vpack.c.bf16 (!%p3644_p6), %v2771_v61, %v2769_v60  ;;  %v3059_v60 = vld [vmem:[%s5734_s15 + $0x48] sm:$0xff] (!%p3644_p6) }
 0x21d   : > { %3738 = vmatpush3.bf16.msra.mxu1 %v3737_v2  ;;  %v2737_v2 = vld [vmem:[#allocation14 + $0x20] sm:$0xff] (!%p3644_p6)  ;;  %3790 = vmatprep.subr.bf16.mxu0 (!%p3644_p6), %v5446_v1 }
 0x21e   : > { %3741 = vmatprep.subr.msk.bf16.mxu1 (!%p3644_p6), %vm5429_vm5, %v3739_v48 }
 0x29f   : > { %v2233_v3 = vpop.f32.mrb[0].mxu1 }
 0x2a0   : > { %v2235_v4 = vpop.f32.mrb[1].mxu1  ;;  %v3899_v18 = vadd.f32 %v2233_v3, %v801_v16  ;;  %v2739_v3 = vld [vmem:[#allocation14 + $0x30] sm:$0xff] (!%p3644_p6) }
 0x2a1   : > { %v2237_v5 = vpop.f32.mrb[2].mxu1  ;;  %v3902_v21 = vadd.f32 %v2235_v4, %v805_v17  ;;  %v2742_v4 = vld [vmem:[#allocation14 + $0x48] sm:$0xff] (!%p3644_p6)  ;;  %v5451_v7 = vpack.c.bf16 (!%p3644_p6), %v2739_v3, %v2737_v2  ;;  %v2745_v17 = vld [vmem:[#allocation14 + $0x60] sm:$0xff] (!%p3644_p6)  ;;  %v2693_v3 = vld [vmem:[#allocation11] sm:$0x3] (!%p3644_p6) }
 0x2a2   : > { %v2238_v6 = vpop.f32.mrb[3].mxu1  ;;  %v2744_v5 = vld [vmem:[#allocation14 + $0x58] sm:$0xff] (!%p3644_p6) }
 0x2a3   : > { %v5453_v8 = vpack.c.bf16 (!%p3644_p6), %v2744_v5, %v2742_v4  ;;  %3792 = vmatpush1.bf16.msra.mxu0 (!%p3644_p6), %v5451_v7 }
 0x2a5   : > { %3794 = vmatprep.subr.bf16.mxu0 (!%p3644_p6), %v5453_v8 }
 0x2d3   : > { %v2438_v9 = vpop.f32.mrb[4].mxu1 }
 0x2d4   : > { %v2440_v10 = vpop.f32.mrb[5].mxu1 }
 0x2d5   : > { %v2442_v11 = vpop.f32.mrb[6].mxu1 }
 0x2d6   : > { %v2443_v13 = vpop.f32.mrb[7].mxu1  ;;  %v2746_v11 = vld [vmem:[#allocation14 + $0x68] sm:$0xff] (!%p3644_p6) }
 0x2d7   : > { %v2748_v13 = vld [vmem:[#allocation14 + $0x78] sm:$0xff] (!%p3644_p6) }
 0x2d8   : > { %v5459_v16 = vpack.c.bf16 (!%p3644_p6), %v2748_v13, %v2746_v11  ;;  %v2702_v13 = vrot.slane (!%p3644_p6), %v2693_v3, %v5423_v15 }
 0x2e0   : > { %v2397_v22 = vpop.f32.mrb[0].mxu0 }
 0x2e1   : > { %v3900_v23 = vadd.f32 %v3899_v18, %v2397_v22  ;;  %v2399_v25 = vpop.f32.mrb[1].mxu0  ;;  %v2747_v18 = vld [vmem:[#allocation14 + $0x70] sm:$0xff] (!%p3644_p6)  ;;  %v2752_v22 = vld [vmem:[#allocation14 + $0x98] sm:$0xff] (!%p3644_p6) }
 0x2e2   : > { %v3903_v26 = vadd.f32 %v3902_v21, %v2399_v25  ;;  %v2401_v27 = vpop.f32.mrb[2].mxu0  ;;  %v2750_v21 = vld [vmem:[#allocation14 + $0x88] sm:$0xff] (!%p3644_p6) }
 0x2e3   : > { %v3901_v28 = vadd.f32 %v3900_v23, %v2438_v9  ;;  %v2402_v19 = vpop.f32.mrb[3].mxu0  ;;  %v2741_v9 = vld [vmem:[#allocation14 + $0x40] sm:$0xff] (!%p3644_p6)  ;;  %v5463_v23 = vpack.c.bf16 (!%p3644_p6), %v2747_v18, %v2745_v17  ;;  %v5465_v25 = vpack.c.bf16 (!%p3644_p6), %v2752_v22, %v2750_v21  ;;  %v2751_v27 = vld [vmem:[#allocation14 + $0x90] sm:$0xff] (!%p3644_p6) }
 0x2e4   : > { %v3904_v20 = vadd.f32 %v3903_v26, %v2440_v10  ;;  %v2743_v10 = vld [vmem:[#allocation14 + $0x50] sm:$0xff] (!%p3644_p6)  ;;  %v2749_v26 = vld [vmem:[#allocation14 + $0x80] sm:$0xff] (!%p3644_p6)  ;;  %v2756_v19 = vld [vmem:[#allocation14 + $0xb8] sm:$0xff] (!%p3644_p6) }
 0x2e5   : > { %v2445_v24 = vsub.f32 0.0, %v3901_v28  ;;  %v5457_v14 = vpack.c.bf16 (!%p3644_p6), %v2743_v10, %v2741_v9  ;;  %v2698_v9 = vrot.slane (!%p3644_p6), %v2693_v3, %v5419_v12  ;;  %v3062_v3 = vld [vmem:[%s5734_s15 + $0x60] sm:$0xff] (!%p3644_p6) }
 0x2e6   : > { %v2446_v29 = vsub.f32 0.0, %v3904_v20 }
 0x2e7   : > { %v2447_v30 = vmul.f32 1.442695, %v2445_v24  ;;  %3796 = vmatpush1.bf16.msra.mxu0 (!%p3644_p6), %v5457_v14 }
 0x2e8   : > { %v2449_v31 = vmul.f32 1.442695, %v2446_v29  ;;  %3798 = vmatprep.subr.bf16.mxu0 (!%p3644_p6), %v5459_v16  ;;  %v5469_v29 = vpack.c.bf16 (!%p3644_p6), %v2751_v27, %v2749_v26 }
 0x2e9   : > { %4436 = vpow2.f32 %v2447_v30 }
 0x2ea   : > { %4438 = vpow2.f32 %v2449_v31  ;;  %v2753_v31 = vld [vmem:[#allocation14 + $0xa0] sm:$0xff] (!%p3644_p6) }
 0x2eb   : > { %3800 = vmatpush1.bf16.msra.mxu0 (!%p3644_p6), %v5463_v23 }
 0x2ec   : > { %3802 = vmatprep.subr.bf16.mxu0 (!%p3644_p6), %v5465_v25 }
 0x2ef   : > { %3804 = vmatpush1.bf16.msra.mxu0 (!%p3644_p6), %v5469_v29 }
 0x2f3   : > { %v4437_v32 = vpop.eup %4436 }
 0x2f4   : > { %v4439_v33 = vpop.eup %4438  ;;  %v2451_v34 = vadd.f32 1.0, %v4437_v32  ;;  %v2755_v32 = vld [vmem:[#allocation14 + $0xb0] sm:$0xff] (!%p3644_p6) }
 0x2f5   : > { %v2452_v35 = vadd.f32 1.0, %v4439_v33  ;;  %v2758_v33 = vld [vmem:[#allocation14 + $0xc8] sm:$0xff] (!%p3644_p6) }
 0x2f6   : > { %4440 = vrcp.f32 %v2451_v34  ;;  %v2760_v34 = vld [vmem:[#allocation14 + $0xd8] sm:$0xff] (!%p3644_p6) }
 0x2f7   : > { %4442 = vrcp.f32 %v2452_v35  ;;  %v5475_v35 = vpack.c.bf16 (!%p3644_p6), %v2755_v32, %v2753_v31 }
 0x300   : > { %v4441_v36 = vpop.eup %4440 }
 0x301   : > { %v4443_v37 = vpop.eup %4442  ;;  %v2457_v39 = vmul.f32 %v4441_v36, %v3901_v28  ;;  %v2754_v28 = vld [vmem:[#allocation14 + $0xa8] sm:$0xff] (!%p3644_p6)  ;;  %v5477_v36 = vpack.c.bf16 (!%p3644_p6), %v2760_v34, %v2758_v33 }
 0x302   : > { %v2458_v38 = vmul.f32 %v4443_v37, %v3904_v20  ;;  %v5471_v30 = vpack.c.bf16 (!%p3644_p6), %v2756_v19, %v2754_v28  ;;  %v2757_v37 = vld [vmem:[#allocation14 + $0xc0] sm:$0xff] (!%p3644_p6) }
 0x304   : > { %2556 = vmatprep.mubr.f32.mxu1 %v2458_v38  ;;  %3806 = vmatprep.subr.bf16.mxu0 (!%p3644_p6), %v5471_v30  ;;  %v2759_v38 = vld [vmem:[#allocation14 + $0xd0] sm:$0xff] (!%p3644_p6) }
 0x305   : > { %2557 = vmatmul.mubr.f32.vlgmr.msra.gmra.mrb[8].mxu1 %v2457_v39  ;;  %v2762_v39 = vld [vmem:[#allocation14 + $0xe8] sm:$0xff] (!%p3644_p6)  ;;  %3808 = vmatpush1.bf16.msra.mxu0 (!%p3644_p6), %v5475_v35 }
 0x306   : > { %2672 = vmatprep.mubr.f32.mxu1 (!%p3644_p6), %v4747_v53  ;;  %3744 = vmatpush1.bf16.msk.msra.mxu1 (!%p3644_p6), %vm5429_vm5, %v3742_v52  ;;  %v2765_v52 = vld [vmem:[#allocation14 + $0x100] sm:$0xff] (!%p3644_p6) }
 0x307   : > { %3746 = vmatprep.subr.bf16.mxu1 (!%p3644_p6), %v5438_v58  ;;  %3810 = vmatprep.subr.bf16.mxu0 (!%p3644_p6), %v5477_v36 }
 0x3d8   : > { %v3694_v40 = vpop.f32.mrb[8].mxu1  ;;  %2568 = sbr.rel (%p3644_p6) target bundleno = 2122 (0x84a), region = 104 }
 0x3d9   : > { %v3695_v42 = vpop.f32.mrb[9].mxu1 }
 0x3da   : > { %v3696_v43 = vadd.f32 %v3695_v42, %v3694_v40  ;;  %v2764_v40 = vld [vmem:[#allocation14 + $0xf8] sm:$0xff] (!%p3644_p6) }
 0x3db   : > { %v5483_v42 = vpack.c.bf16 (!%p3644_p6), %v2764_v40, %v2762_v39 }
 0x3dc   : > { %v2562_v44 = vadd.f32 %v3696_v43, %v2459_v41  ;;  %v5481_v41 = vpack.c.bf16 (!%p3644_p6), %v2759_v38, %v2757_v37  ;;  %v2761_v43 = vld [vmem:[#allocation14 + $0xe0] sm:$0xff] (!%p3644_p6)  ;;  %v4748_v38 = vmov (!%p3644_p6), 1.0  }
 0x3de   : > { %2564 = vst.msk [vmem:[#allocation2] sm:$0xff] %vm2563_vm2, %v2562_v44  ;;  %v2763_v44 = vld [vmem:[#allocation14 + $0xf0] sm:$0xff] (!%p3644_p6)  ;;  %3812 = vmatpush1.bf16.msra.mxu0 (!%p3644_p6), %v5481_v41 }
 0x3df   : > { %3814 = vmatprep.subr.bf16.mxu0 %v5483_v42  ;;  %v5487_v48 = vpack.c.bf16 %v2763_v44, %v2761_v43  ;;  %v3052_v44 = vld [vmem:[%s5734_s15 + $0x10] sm:$0xff] }
 0x3e2   : > { %3816 = vmatpush1.bf16.msra.mxu0 %v5487_v48 }
 0x3e5   : > { %v2569_v51 = vld [vmem:[#allocation2] sm:$0xff] }
 0x3e6   : > { %v5436_v57 = vadd.f32 %v3645_v54, %v2569_v51  ;;  %v5492_v51 = vpack.c.bf16 %v2768_v46, %v2766_v45  ;;  %v2767_v54 = vld [vmem:[#allocation14 + $0x110] sm:$0xff]  ;;  %v4749_v45 = vmov 0.0|0.0  }
 0x3e7   : > { %v5499_v55 = vpack.c.bf16 %v2767_v54, %v2765_v52  ;;  %v3055_v52 = vld [vmem:[%s5734_s15 + $0x28] sm:$0xff] }
 0x3e8   : > { %v2578_v0 = vsub.f32 0.0, %v5436_v57  ;;  %3818 = vmatprep.subr.bf16.mxu0 %v5492_v51 }
 0x3e9   : > { %3820 = vmatpush1.bf16.msra.mxu0 %v5499_v55 }
 0x3ea   : > { %v2579_v6 = vmul.f32 1.442695, %v2578_v0  ;;  %v2679_v0 = vld [vmem:[#allocation10] sm:$0x3] }
 0x3eb   : > { %v2717_v2 = vadd.f32 0.4, %v2679_v0  ;;  %v2856_v4 = vadd.f32 0.6, %v2679_v0  ;;  %v2954_v5 = vadd.f32 0.8, %v2679_v0  ;;  %v2688_v11 = vrot.slane %v2679_v0, %v5423_v15 }
 0x3ec   : > { %4444 = vpow2.f32 %v2579_v6  ;;  %v2684_v6 = vrot.slane %v2679_v0, %v5419_v12  ;;  %v3061_v0 = vld [vmem:[%s5734_s15 + $0x58] sm:$0xff] }
 0x3ed   : > { %v2722_v10 = vrot.slane %v2717_v2, %v5419_v12  ;;  %v2726_v17 = vrot.slane %v2717_v2, %v5423_v15  ;;  %v2861_v18 = vrot.slane %v2856_v4, %v5419_v12  ;;  %v2865_v21 = vrot.slane %v2856_v4, %v5423_v15  ;;  %v3063_v4 = vld [vmem:[%s5734_s15 + $0x68] sm:$0xff] }
 0x3ee   : > { %v2959_v22 = vrot.slane %v2954_v5, %v5419_v12  ;;  %v2963_v26 = vrot.slane %v2954_v5, %v5423_v15  ;;  %v3884_v5 = vpack.c.bf16 %v3063_v4, %v3062_v3 }
 0x3f6   : > { %v4445_v20 = vpop.eup %4444 }
 0x3f7   : > { %v2581_v24 = vadd.f32 1.0, %v4445_v20 }
 0x3f9   : > { %4446 = vrcp.f32 %v2581_v24 }
 0x403   : > { %v4447_v47 = vpop.eup %4446 }
 0x404   : > { %v5490_v50 = vmul.f32 %v4447_v47, %v5436_v57  ;;  %v2772_v57 = vld [vmem:[#allocation14 + $0x138] sm:$0xff]  ;;  %v3053_v47 = vld [vmem:[%s5734_s15 + $0x18] sm:$0xff] }
 0x405   : > { %v5518_v59 = vpack.c.bf16 %v2772_v57, %v2770_v56  ;;  %v3057_v56 = vld [vmem:[%s5734_s15 + $0x38] sm:$0xff] }
 0x406   : > { %3648 = vmatmul.mubr.msk.f32.vlgmr.msra.gmra.mrb[0].mxu1 %vm2563_vm2, %v5490_v50 }
 0x407   : > { %3748 = vmatpush1.bf16.msra.mxu1 %v5442_v62  ;;  %3822 = vmatprep.subr.bf16.mxu0 %v5518_v59 }
 0x408   : > { %3750 = vmatprep.subr.bf16.mxu1 %v5446_v1  ;;  %3824 = vmatpush1.bf16.msra.mxu0 %v5520_v63 }
 0x409   : > { %3865 = vmatprep.subr.bf16.mxu0 %v4749_v45 }
 0x40b   : > { %3752 = vmatpush1.bf16.msra.mxu1 %v5451_v7 }
 0x40c   : > { %3754 = vmatprep.subr.bf16.mxu1 %v5453_v8 }
 0x40f   : > { %3756 = vmatpush1.bf16.msra.mxu1 %v5457_v14 }
 0x410   : > { %3758 = vmatprep.subr.bf16.mxu1 %v5459_v16 }
 0x413   : > { %3760 = vmatpush1.bf16.msra.mxu1 %v5463_v23 }
 0x414   : > { %3762 = vmatprep.subr.bf16.mxu1 %v5465_v25 }
 0x417   : > { %3764 = vmatpush1.bf16.msra.mxu1 %v5469_v29 }
 0x418   : > { %3766 = vmatprep.subr.bf16.mxu1 %v5471_v30 }
 0x41b   : > { %3768 = vmatpush1.bf16.msra.mxu1 %v5475_v35 }
 0x41c   : > { %3770 = vmatprep.subr.bf16.mxu1 %v5477_v36 }
 0x41f   : > { %3772 = vmatpush1.bf16.msra.mxu1 %v5481_v41 }
 0x420   : > { %3774 = vmatprep.subr.bf16.mxu1 %v5483_v42 }
 0x423   : > { %3776 = vmatpush1.bf16.msra.mxu1 %v5487_v48 }
 0x424   : > { %3778 = vmatprep.subr.bf16.mxu1 %v5492_v51 }
 0x427   : > { %3780 = vmatpush1.bf16.msra.mxu1 %v5499_v55 }
 0x428   : > { %3782 = vmatprep.subr.bf16.mxu1 %v5518_v59 }
 0x42b   : > { %3784 = vmatpush1.bf16.msra.mxu1 %v5520_v63 }
 0x42c   : > { %3826 = vmatprep.subr.bf16.mxu1 %v5438_v58 }
 0x4d9   : > { %v2674_v58 = vpop.f32.mrb[0].mxu1 }
 0x4da   : > { %v2676_v27 = vpop.f32.mrb[1].mxu1  ;;  %vm2691_vm7 = vcmp.ge.f32.partialorder %v2674_v58, %v2684_v6  ;;  %vm2705_vm8 = vcmp.lt.f32.partialorder %v2674_v58, %v2698_v9  ;;  %v5537_v28 = vsub.f32 %v2674_v58, %v2684_v6  ;;  %v2729_v19 = vsub.f32 %v2722_v10, %v2674_v58  ;;  %v3064_v6 = vld [vmem:[%s5734_s15 + $0x70] sm:$0xff]  ;;  %v3065_v9 = vld [vmem:[%s5734_s15 + $0x78] sm:$0xff] }
 0x4db   : > { %vm2692_vm9 = vcmp.ge.f32.partialorder %v2676_v27, %v2688_v11  ;;  %vm2706_vm10 = vcmp.lt.f32.partialorder %v2676_v27, %v2702_v13  ;;  %v5539_v20 = vsub.f32 %v2676_v27, %v2688_v11  ;;  %vm2707_vm11 = vmand %vm2691_vm7, %vm2705_vm8  ;;  %v2730_v24 = vsub.f32 %v2726_v17, %v2676_v27  ;;  %v3066_v11 = vld [vmem:[%s5734_s15 + $0x80] sm:$0xff]  ;;  %v3067_v13 = vld [vmem:[%s5734_s15 + $0x88] sm:$0xff] }
 0x4dc   : > { %vm2708_vm12 = vmand %vm2692_vm9, %vm2706_vm10  ;;  %v3649_v31 = vsel %vm2707_vm11, 1.0, %v4747_v53  ;;  %v2715_v32 = vmul.f32 5.0, %v5537_v28  ;;  %v5546_v34 = vsub.f32 %v2861_v18, %v2674_v58  ;;  %v5548_v37 = vsub.f32 %v2865_v21, %v2676_v27 }
 0x4dd   : > { %v3650_v12 = vsel %vm2708_vm12, 1.0, %v4747_v53  ;;  %v2716_v15 = vmul.f32 5.0, %v5539_v20  ;;  %v5550_v40 = vsub.f32 %v2959_v22, %v2674_v58  ;;  %v5552_v43 = vsub.f32 %v2963_v26, %v2676_v27 }
 0x4de   : > { %3651 = vmatprep.mubr.msk.f32.mxu1 %vm2773_vm6, %v3650_v12  ;;  %v2848_v33 = vmul.f32 %v3649_v31, %v2715_v32  ;;  %v3887_v10 = vpack.c.bf16 %v3065_v9, %v3064_v6  ;;  %v3890_v17 = vpack.c.bf16 %v3067_v13, %v3066_v11  ;;  %v2870_v18 = vmul.f32 2.5, %v5546_v34  ;;  %v3069_v34 = vld [vmem:[%s5734_s15 + $0x98] sm:$0xff] }
 0x4df   : > { %3652 = vmatmul.mubr.msk.f32.vlgmr.msra.gmra.mrb[2].mxu1 %vm2707_vm11, %v4748_v38  ;;  %v2849_v39 = vmul.f32 %v3650_v12, %v2716_v15  ;;  %v2871_v21 = vmul.f32 2.5, %v5548_v37  ;;  %v2953_v32 = vmul.f32 1.6666666, %v5539_v20 }
 0x4e0   : > { %3828 = vmatpush1.bf16.msra.mxu1 %v5442_v62  ;;  %v2731_v62 = vmul.f32 5.0, %v2729_v19 }
 0x4e1   : > { %3830 = vmatprep.subr.bf16.mxu1 %v5446_v1 }
 0x4e4   : > { %3832 = vmatpush1.bf16.msra.mxu1 %v5451_v7  ;;  %v2732_v7 = vmul.f32 5.0, %v2730_v24  ;;  %v2952_v24 = vmul.f32 1.6666666, %v5537_v28 }
 0x4e5   : > { %3834 = vmatprep.subr.bf16.mxu1 %v5453_v8 }
 0x4e8   : > { %3836 = vmatpush1.bf16.msra.mxu1 %v5457_v14 }
 0x4e9   : > { %3838 = vmatprep.subr.bf16.mxu1 %v5459_v16 }
 0x4ec   : > { %3840 = vmatpush1.bf16.msra.mxu1 %v5463_v23 }
 0x4ed   : > { %3842 = vmatprep.subr.bf16.mxu1 %v5465_v25  ;;  %v2854_v25 = vmul.f32 2.5, %v5537_v28  ;;  %v2585_v28 = vsub.f32 0.0, %v5490_v50 }
 0x4ef   : > { %v2586_v38 = vmul.f32 1.442695, %v2585_v28 }
 0x4f0   : > { %3844 = vmatpush1.bf16.msra.mxu1 %v5469_v29 }
 0x4f1   : > { %3846 = vmatprep.subr.bf16.mxu1 %v5471_v30  ;;  %v2855_v30 = vmul.f32 2.5, %v5539_v20  ;;  %4448 = vpow2.f32 %v2586_v38 }
 0x4f4   : > { %3848 = vmatpush1.bf16.msra.mxu1 %v5475_v35 }
 0x4f5   : > { %3850 = vmatprep.subr.bf16.mxu1 %v5477_v36 }
 0x4f8   : > { %3852 = vmatpush1.bf16.msra.mxu1 %v5481_v41  ;;  %v3050_v41 = vld [vmem:[%s5734_s15] sm:$0xff] }
 0x4f9   : > { %3854 = vmatprep.subr.bf16.mxu1 %v5483_v42  ;;  %v3051_v42 = vld [vmem:[%s5734_s15 + $0x8] sm:$0xff] }
 0x4fa   : > { %v3866_v46 = vpack.c.bf16 %v3051_v42, %v3050_v41 }
 0x4fb   : > { %v4449_v20 = vpop.eup %4448 }
 0x4fc   : > { %3856 = vmatpush1.bf16.msra.mxu1 %v5487_v48  ;;  %v3869_v48 = vpack.c.bf16 %v3053_v47, %v3052_v44 }
 0x4fd   : > { %3858 = vmatprep.subr.bf16.mxu1 %v5492_v51  ;;  %v3054_v51 = vld [vmem:[%s5734_s15 + $0x20] sm:$0xff] }
 0x4fe   : > { %v3872_v54 = vpack.c.bf16 %v3055_v52, %v3054_v51 }
 0x500   : > { %3860 = vmatpush1.bf16.msra.mxu1 %v5499_v55  ;;  %v3056_v55 = vld [vmem:[%s5734_s15 + $0x30] sm:$0xff] }
 0x501   : > { %3862 = vmatprep.subr.bf16.mxu1 %v5518_v59  ;;  %v3875_v57 = vpack.c.bf16 %v3057_v56, %v3056_v55  ;;  %v3058_v59 = vld [vmem:[%s5734_s15 + $0x40] sm:$0xff] }
 0x502   : > { %v3878_v61 = vpack.c.bf16 %v3059_v60, %v3058_v59 }
 0x504   : > { %3864 = vmatpush1.bf16.msra.mxu1 %v5520_v63  ;;  %v3060_v63 = vld [vmem:[%s5734_s15 + $0x50] sm:$0xff] }
 0x505   : > { %v3881_v2 = vpack.c.bf16 %v3061_v0, %v3060_v63 }
 0x5b2   : > { %v2843_v1 = vpop.f32.mrb[2].mxu1 }
 0x5b3   : > { %v2850_v8 = vmul.f32 %v2843_v1, %v2731_v62  ;;  %v2845_v14 = vpop.f32.mrb[3].mxu1  ;;  %v2968_v62 = vmul.f32 1.6666666, %v5550_v40 }
 0x5b4   : > { %v2851_v16 = vmul.f32 %v2845_v14, %v2732_v7  ;;  %v2969_v7 = vmul.f32 1.6666666, %v5552_v43 }
 0x5b5   : > { %v2852_v23 = vadd.f32 %v2850_v8, %v2848_v33  ;;  %v3068_v33 = vld [vmem:[%s5734_s15 + $0x90] sm:$0xff] }
 0x5b6   : > { %v2853_v29 = vadd.f32 %v2851_v16, %v2849_v39  ;;  %v3893_v37 = vpack.c.bf16 %v3069_v34, %v3068_v33  ;;  %v2588_v39 = vadd.f32 1.0, %v4449_v20  ;;  %v2592_v16 = vld [vmem:[%s5735_s28] sm:$0xff] }
 0x5b7   : > { %v2946_v35 = vmul.f32 %v2854_v25, %v2852_v23 }
 0x5b8   : > { %3653 = vmatprep.mubr.msk.f32.mxu0 %vm2773_vm6, %v2853_v29  ;;  %v2947_v36 = vmul.f32 %v2855_v30, %v2853_v29  ;;  %4450 = vrcp.f32 %v2588_v39 }
 0x5b9   : > { %2940 = vmatmul.mubr.f32.vlgmr.msra.gmra.mrb[0].mxu0 %v2852_v23  ;;  %v2593_v23 = vld [vmem:[%s5735_s28 + $0x8] sm:$0x3] }
 0x5ba   : > { %3867 = vmatpush1.bf16.msra.mxu0 %v3866_v46 }
 0x5bb   : > { %3868 = vmatprep.subr.bf16.mxu0 %v4749_v45 }
 0x5be   : > { %3870 = vmatpush1.bf16.msra.mxu0 %v3869_v48 }
 0x5bf   : > { %3871 = vmatprep.subr.bf16.mxu0 %v4749_v45 }
 0x5c2   : > { %3873 = vmatpush1.bf16.msra.mxu0 %v3872_v54  ;;  %v4451_v40 = vpop.eup %4450 }
 0x5c3   : > { %3874 = vmatprep.subr.bf16.mxu0 %v4749_v45  ;;  %v2591_v43 = vmul.f32 %v4451_v40, %v5490_v50 }
 0x5c6   : > { %3876 = vmatpush1.bf16.msra.mxu0 %v3875_v57 }
 0x5c7   : > { %3877 = vmatprep.subr.bf16.mxu0 %v4749_v45 }
 0x5ca   : > { %3879 = vmatpush1.bf16.msra.mxu0 %v3878_v61 }
 0x5cb   : > { %3880 = vmatprep.subr.bf16.mxu0 %v4749_v45 }
 0x5ce   : > { %3882 = vmatpush1.bf16.msra.mxu0 %v3881_v2 }
 0x5cf   : > { %3883 = vmatprep.subr.bf16.mxu0 %v4749_v45 }
 0x5d2   : > { %3885 = vmatpush1.bf16.msra.mxu0 %v3884_v5 }
 0x5d3   : > { %3886 = vmatprep.subr.bf16.mxu0 %v4749_v45 }
 0x5d6   : > { %3888 = vmatpush1.bf16.msra.mxu0 %v3887_v10 }
 0x5d7   : > { %3889 = vmatprep.subr.bf16.mxu0 %v4749_v45 }
 0x5da   : > { %3891 = vmatpush1.bf16.msra.mxu0 %v3890_v17 }
 0x5db   : > { %3892 = vmatprep.subr.bf16.mxu0 %v4749_v45 }
 0x5de   : > { %3894 = vmatpush1.bf16.msra.mxu0 %v3893_v37 }
 0x5df   : > { %3895 = vmatprep.subr.bf16.mxu0 %v4749_v45 }
 0x68c   : > { %v2941_v58 = vpop.f32.mrb[0].mxu0 }
 0x68d   : > { %v2948_v22 = vmul.f32 %v2941_v58, %v2870_v18  ;;  %v2943_v26 = vpop.f32.mrb[1].mxu0 }
 0x68e   : > { %v2949_v27 = vmul.f32 %v2943_v26, %v2871_v21 }
 0x68f   : > { %v2950_v19 = vadd.f32 %v2948_v22, %v2946_v35  ;;  %v3896_v35 = vpack.c.bf16 %v2593_v23, %v2592_v16 }
 0x690   : > { %v2951_v31 = vadd.f32 %v2949_v27, %v2947_v36 }
 0x691   : > { %v3044_v12 = vmul.f32 %v2952_v24, %v2950_v19 }
 0x692   : > { %3654 = vmatprep.mubr.msk.f32.mxu1 %vm2773_vm6, %v2951_v31  ;;  %v3045_v15 = vmul.f32 %v2953_v32, %v2951_v31 }
 0x693   : > { %3038 = vmatmul.mubr.f32.vlgmr.msra.gmra.mrb[4].mxu1 %v2950_v19 }
 0x766   : > { %v3039_v1 = vpop.f32.mrb[4].mxu1 }
 0x767   : > { %v3046_v8 = vmul.f32 %v3039_v1, %v2968_v62  ;;  %v3041_v14 = vpop.f32.mrb[5].mxu1 }
 0x768   : > { %v3047_v25 = vmul.f32 %v3041_v14, %v2969_v7 }
 0x769   : > { %v3048_v29 = vadd.f32 %v3046_v8, %v3044_v12 }
 0x76a   : > { %v3049_v30 = vadd.f32 %v3047_v25, %v3045_v15 }
 0x76c   : > { %3655 = vmatprep.mubr.msk.f32.mxu0 %vm2773_vm6, %v3049_v30 }
 0x76d   : > { %3138 = vmatmul.mubr.f32.vlgmr.msra.gmra.mrb[2].mxu0 %v3048_v29 }
 0x76e   : > { %3898 = vmatpush3.bf16.msk.msra.mxu0 %vm5429_vm5, %v3896_v35  ;;  %3704 = vmatprep.mubr.msk.f32.mxu0 %vm4750_vm13, %v4747_v53 }
 0x775   : > { %3705 = vmatmul.mubr.msk.f32.vlgmr.msra.gmra.mrb[2].mxu0 %vm2563_vm2, %v2591_v43 }
 0x848   : > { %v3215_v36 = vpop.f32.mrb[2].mxu0 }
 0x849   : > { %3220 = vst.msk [vmem:[%s5736_s8] sm:$0xff] %vm3219_vm14, %v3215_v36  ;;  %v3706_v41 = vpop.f32.mrb[3].mxu0 }
 0x84a PF: > { %s5737_s20 = sld [smem:[#allocation21_spill]]  ;;  %s5738_s27 = sld [smem:[#allocation22_spill]] }
 0x84b   : > { %s5739_s17 = smov %s4722_s18  ;;  %s5740_s18 = smov %s4726_s19 }
 0x850   : > { %p25_p10 = scmp.ge.s32.totalorder %s5737_s20, 6   ;;  %s5741_s19 = smov %s5738_s27 }
 0x852   :  { %27 = sbr.rel (!%p25_p10) target bundleno = 15 (0xf), region = 147 }
 0x859   :  { %3232 = vsyncpa [#allocation4], 1 }
 0x85a   :  { %3234 = vsyncpa [#allocation4 + $0x1], 1 }
 0x85b   :  { %3235 = vsyncpa [#allocation6], 1 }
 0x85c   :  { %3237 = vsyncpa [#allocation6 + $0x1], 1 }
 0x85d   :  { %3238 = vsyncpa [#allocation9], 1 }
 0x85e   :  { %3239 = vsyncpa [#allocation12], 1 }
 0x85f   :  { %3240 = vsyncpa [#allocation15], 1 }

</bundles_post_ra>
